<compile_context>
chip_gen: v5e
topology: v5e:2x2
jax: 0.10.0
libtpu: 0.0.40
codegen_flags: <defaults>
</compile_context>

<pallas_src>
import functools

import jax
import jax.numpy as jnp
from jax.experimental import pallas as pl
from jax.experimental.pallas import tpu as pltpu

HIDDEN_IN = 400        # logical fc0 width / BN features
HIDDEN_OUT = 300       # logical fc1 width
HIDDEN_IN_PAD = 512    # lane-padded (multiple of 128)
HIDDEN_OUT_PAD = 384
BN_EPS = 1e-5
LEAKY_SLOPE = 0.01     # F.leaky_relu default


def _round_up(x, m):
    return (x + m - 1) // m * m


def _leaky_relu(x):
    return jnp.where(x >= 0, x, LEAKY_SLOPE * x)


# ---------------------------------------------------------------------------
# Fused forward kernel.  grid = (phase, batch_block), both 'arbitrary'.
# ---------------------------------------------------------------------------
def _actor_fused_kernel(x_ref, w0_ref, gamma_ref, beta_ref,
                        w1_ref, b1_ref, w2_ref, b2_ref,
                        o_ref,
                        h0_scr, sum_scr, sq_scr, scale_scr, shift_scr,
                        *, inv_batch):
    phase = pl.program_id(0)
    blk = pl.program_id(1)

    # ---- phase 0: fc0, stash h0, accumulate batch statistics --------------
    @pl.when(phase == 0)
    def _():
        @pl.when(blk == 0)
        def _():
            sum_scr[...] = jnp.zeros_like(sum_scr)
            sq_scr[...] = jnp.zeros_like(sq_scr)

        # fc0 (no bias: cancelled exactly by BN's batch-mean subtraction).
        h0 = jnp.dot(x_ref[...].astype(jnp.bfloat16), w0_ref[...],
                     preferred_element_type=jnp.float32)
        # Single-pass stats (E[x], E[x^2]); clamped later so no NaN even under
        # cancellation.  Fine for these small, well-conditioned activations.
        sum_scr[...] += jnp.sum(h0, axis=0, keepdims=True)
        sq_scr[...] += jnp.sum(h0 * h0, axis=0, keepdims=True)
        h0_scr[blk] = h0.astype(jnp.bfloat16)

    # ---- phase 1: fold BN once, then BN + leaky_relu + fc1 + fc2 + tanh ---
    @pl.when(phase == 1)
    def _():
        @pl.when(blk == 0)
        def _():
            mean = sum_scr[...] * inv_batch
            var = jnp.maximum(sq_scr[...] * inv_batch - mean * mean, 0.0)
            scale = gamma_ref[...] * jax.lax.rsqrt(var + BN_EPS)
            scale_scr[...] = scale
            shift_scr[...] = beta_ref[...] - mean * scale

        h0 = h0_scr[blk].astype(jnp.float32)
        # fused BatchNorm (training statistics): one mul + one add per element
        h0 = _leaky_relu(h0 * scale_scr[...] + shift_scr[...])
        # fc1
        h1 = jnp.dot(h0.astype(jnp.bfloat16), w1_ref[...],
                     preferred_element_type=jnp.float32) + b1_ref[...]
        h1 = _leaky_relu(h1)
        # fc2 + tanh; output is lane-padded (>=128), sliced in the wrapper
        h2 = jnp.dot(h1.astype(jnp.bfloat16), w2_ref[...],
                     preferred_element_type=jnp.float32) + b2_ref[...]
        o_ref[...] = jnp.tanh(h2)


def actor_forward(state, kernel_params, out_size, block_batch=256):
    """Fused single-pallas_call forward of the Actor (BN training-mode stats)."""
    w0, gamma, beta, w1, b1, w2, b2 = kernel_params
    batch, in_size = state.shape
    assert batch > 1, "BatchNorm1d in training mode requires batch > 1"
    out_pad = b2.shape[1]

    # Balanced batch tiling: fewest blocks of <= block_batch rows, each block
    # rounded up to a multiple of 16 (bf16 sublane packing of the h0 stash).
    # This caps padding waste at <= 15 rows per block.
    n_blocks = int(pl.cdiv(batch, block_batch))
    tb = _round_up(int(pl.cdiv(batch, n_blocks)), 16)
    batch_pad = tb * n_blocks

    x = state
    if batch_pad != batch:
        # Zero rows give h0 == 0 exactly (fc0 has no bias in the kernel), so
        # they contribute nothing to the batch statistics (which divide by the
        # *logical* batch); their outputs are sliced away below.
        x = jnp.pad(x, ((0, batch_pad - batch), (0, 0)))

    # Explicit scoped-VMEM budget: big enough for the h0 stash + weights +
    # tiles on all generations, capped at 48 MiB (v7x has 64 MiB physical).
    h0_scratch_bytes = n_blocks * tb * HIDDEN_IN_PAD * 2
    vmem_limit = min(48 * 2**20, max(16 * 2**20, h0_scratch_bytes + 12 * 2**20))

    kernel = functools.partial(_actor_fused_kernel, inv_batch=1.0 / batch)

    out = pl.pallas_call(
        kernel,
        out_shape=jax.ShapeDtypeStruct((batch_pad, out_pad), jnp.float32),
        grid=(2, n_blocks),
        in_specs=[
            # x is only needed in phase 0: keep its block index constant in
            # phase 1 so it is not re-DMA'd there.
            pl.BlockSpec((tb, in_size), lambda p, b: (b * (1 - p), 0)),
            pl.BlockSpec((in_size, HIDDEN_IN_PAD), lambda p, b: (0, 0)),
            pl.BlockSpec((1, HIDDEN_IN_PAD), lambda p, b: (0, 0)),
            pl.BlockSpec((1, HIDDEN_IN_PAD), lambda p, b: (0, 0)),
            pl.BlockSpec((HIDDEN_IN_PAD, HIDDEN_OUT_PAD), lambda p, b: (0, 0)),
            pl.BlockSpec((1, HIDDEN_OUT_PAD), lambda p, b: (0, 0)),
            pl.BlockSpec((HIDDEN_OUT_PAD, out_pad), lambda p, b: (0, 0)),
            pl.BlockSpec((1, out_pad), lambda p, b: (0, 0)),
        ],
        # Output is only produced in phase 1: block index stays 0 during
        # phase 0 (no garbage write-backs), walks the batch in phase 1.
        out_specs=pl.BlockSpec((tb, out_pad), lambda p, b: (b * p, 0)),
        scratch_shapes=[
            pltpu.VMEM((n_blocks, tb, HIDDEN_IN_PAD), jnp.bfloat16),  # h0 stash
            pltpu.VMEM((1, HIDDEN_IN_PAD), jnp.float32),              # sum
            pltpu.VMEM((1, HIDDEN_IN_PAD), jnp.float32),              # sum sq
            pltpu.VMEM((1, HIDDEN_IN_PAD), jnp.float32),              # scale
            pltpu.VMEM((1, HIDDEN_IN_PAD), jnp.float32),              # shift
        ],
        compiler_params=pltpu.CompilerParams(
            # Both axes 'arbitrary': batch statistics are accumulated in a
            # per-core VMEM scratch, so the batch axis must NOT be sharded
            # across TensorCores (v7x megacore) or each core would only see
            # part of the batch.  At DDPG batch sizes n_blocks == 1 anyway.
            dimension_semantics=("arbitrary", "arbitrary"),
            vmem_limit_bytes=vmem_limit,
        ),
    )(x, w0, gamma, beta, w1, b1, w2, b2)

    return out[:batch, :out_size]


# ---------------------------------------------------------------------------
# Parameter construction (mirrors Actor.init_parameters) and kernel packing.
# ---------------------------------------------------------------------------
def init_actor_params(key, input_size, output_size):
    """Logical (unpadded, f32) params mirroring the PyTorch init.

    hidden_init uses fan_in = weight.size(0) == out_features, so fc0 weights
    ~ U(-1/sqrt(400), ...), fc1 ~ U(-1/sqrt(300), ...), fc2 ~ U(-0.003, 0.003).
    Biases keep PyTorch's default Linear init U(-1/sqrt(in_features), ...).
    BatchNorm: gamma=1, beta=0.
    """
    k0, k1, k2, kb0, kb1, kb2 = jax.random.split(key, 6)
    lim0 = 1.0 / HIDDEN_IN ** 0.5
    lim1 = 1.0 / HIDDEN_OUT ** 0.5

    w0 = jax.random.uniform(k0, (input_size, HIDDEN_IN), jnp.float32, -lim0, lim0)
    w1 = jax.random.uniform(k1, (HIDDEN_IN, HIDDEN_OUT), jnp.float32, -lim1, lim1)
    w2 = jax.random.uniform(k2, (HIDDEN_OUT, output_size), jnp.float32, -0.003, 0.003)

    bl0 = 1.0 / input_size ** 0.5
    b0 = jax.random.uniform(kb0, (1, HIDDEN_IN), jnp.float32, -bl0, bl0)
    b1 = jax.random.uniform(kb1, (1, HIDDEN_OUT), jnp.float32, -lim0, lim0)
    b2 = jax.random.uniform(kb2, (1, output_size), jnp.float32, -lim1, lim1)

    gamma = jnp.ones((1, HIDDEN_IN), jnp.float32)
    beta = jnp.zeros((1, HIDDEN_IN), jnp.float32)
    return (w0, b0, gamma, beta, w1, b1, w2, b2)


def prepare_actor_params(params):
    """Pad to lane multiples and cast matmul weights to bf16 for the kernel.

    fc0's bias is dropped: BatchNorm in training mode subtracts the batch mean
    immediately after fc0, which cancels any per-feature constant exactly.
    Zero padding keeps all padded features identically zero end-to-end.
    """
    w0, _b0, gamma, beta, w1, b1, w2, b2 = params
    out_size = w2.shape[1]
    out_pad = _round_up(max(out_size, 1), 128)

    def pad_to(a, shape):
        return jnp.pad(a, [(0, s - d) for d, s in zip(a.shape, shape)])

    w0_p = pad_to(w0, (w0.shape[0], HIDDEN_IN_PAD)).astype(jnp.bfloat16)
    gamma_p = pad_to(gamma, (1, HIDDEN_IN_PAD))
    beta_p = pad_to(beta, (1, HIDDEN_IN_PAD))
    w1_p = pad_to(w1, (HIDDEN_IN_PAD, HIDDEN_OUT_PAD)).astype(jnp.bfloat16)
    b1_p = pad_to(b1, (1, HIDDEN_OUT_PAD))
    w2_p = pad_to(w2, (HIDDEN_OUT_PAD, out_pad)).astype(jnp.bfloat16)
    b2_p = pad_to(b2, (1, out_pad))
    return (w0_p, gamma_p, beta_p, w1_p, b1_p, w2_p, b2_p)


# ---------------------------------------------------------------------------
# References for correctness checking.
# ---------------------------------------------------------------------------
def actor_reference_kernel_math(state, kernel_params, out_size):
    """Pure-JAX mirror of the kernel math (bf16 matmuls, bf16 h0 stash)."""
    w0, gamma, beta, w1, b1, w2, b2 = kernel_params
    batch = state.shape[0]
    h0 = jnp.dot(state.astype(jnp.bfloat16), w0,
                 preferred_element_type=jnp.float32)
    mean = jnp.sum(h0, axis=0, keepdims=True) / batch
    var = jnp.maximum(jnp.sum(h0 * h0, axis=0, keepdims=True) / batch
                      - mean * mean, 0.0)
    scale = gamma * jax.lax.rsqrt(var + BN_EPS)
    shift = beta - mean * scale
    h0 = h0.astype(jnp.bfloat16).astype(jnp.float32)   # mirror the VMEM stash
    h0 = _leaky_relu(h0 * scale + shift)
    h1 = _leaky_relu(jnp.dot(h0.astype(jnp.bfloat16), w1,
                             preferred_element_type=jnp.float32) + b1)
    out = jnp.tanh(jnp.dot(h1.astype(jnp.bfloat16), w2,
                           preferred_element_type=jnp.float32) + b2)
    return out[:, :out_size]


def actor_reference_f32(state, params):
    """Full-precision PyTorch-semantics reference (BN training mode)."""
    w0, b0, gamma, beta, w1, b1, w2, b2 = params
    h0 = state @ w0 + b0
    mean = jnp.mean(h0, axis=0, keepdims=True)
    var = jnp.mean((h0 - mean) ** 2, axis=0, keepdims=True)
    h0 = (h0 - mean) / jnp.sqrt(var + BN_EPS) * gamma + beta
    h0 = jnp.where(h0 >= 0, h0, LEAKY_SLOPE * h0)
    h1 = h0 @ w1 + b1
    h1 = jnp.where(h1 >= 0, h1, LEAKY_SLOPE * h1)
    return jnp.tanh(h1 @ w2 + b2)


if __name__ == "__main__":
    batch = 16         # batch norm needs >1 sample in training mode
    input_size = 24    # e.g. Tennis env state size
    output_size = 2    # e.g. Tennis env action size

    key = jax.random.PRNGKey(0)
    kp, kx = jax.random.split(key)
    params = init_actor_params(kp, input_size, output_size)
    kparams = prepare_actor_params(params)
    state = jax.random.normal(kx, (batch, input_size), jnp.float32)

    out = actor_forward(state, kparams, output_size)
    out = jax.block_until_ready(out)
    assert out.shape == (batch, output_size)

    # Tight check vs a reference that uses the exact same (bf16-fed) math.
    ref_bf16 = actor_reference_kernel_math(state, kparams, output_size)
    assert jnp.allclose(out, ref_bf16, atol=2e-3, rtol=2e-3), \
        "mismatch vs bf16-matched reference"

    # Loose check vs the full-f32 PyTorch-semantics reference (bf16 MXU inputs
    # introduce ~0.4% relative error per matmul; output is tanh-bounded).
    ref_f32 = actor_reference_f32(state, params)
    assert jnp.allclose(out, ref_f32, atol=5e-2), "mismatch vs f32 reference"

    print("KERNEL_OK")
</pallas_src>

<mosaic_0001>
module attributes {stable_mosaic.version = 11 : i64} {
  func.func @_actor_fused_kernel(%arg0: i32, %arg1: i32, %arg2: memref<16x24xf32, #tpu.memory_space<vmem>>, %arg3: memref<24x512xbf16, #tpu.memory_space<vmem>>, %arg4: memref<1x512xf32, #tpu.memory_space<vmem>>, %arg5: memref<1x512xf32, #tpu.memory_space<vmem>>, %arg6: memref<512x384xbf16, #tpu.memory_space<vmem>>, %arg7: memref<1x384xf32, #tpu.memory_space<vmem>>, %arg8: memref<384x128xbf16, #tpu.memory_space<vmem>>, %arg9: memref<1x128xf32, #tpu.memory_space<vmem>>, %arg10: memref<16x128xf32, #tpu.memory_space<vmem>>, %arg11: memref<1x16x512xbf16, #tpu.memory_space<vmem>>, %arg12: memref<1x512xf32, #tpu.memory_space<vmem>>, %arg13: memref<1x512xf32, #tpu.memory_space<vmem>>, %arg14: memref<1x512xf32, #tpu.memory_space<vmem>>, %arg15: memref<1x512xf32, #tpu.memory_space<vmem>>) attributes {dimension_semantics = [#tpu.dimension_semantics<arbitrary>, #tpu.dimension_semantics<arbitrary>], iteration_bounds = array<i64: 2, 1>, scalar_prefetch = 0 : i64, scratch_operands = 5 : i64, tpu.core_type = #tpu.core_type<tc>, window_params = [{transform_indices = @transform_0, window_bounds = array<i64: 16, 24>}, {pipeline_mode = #tpu.pipeline_mode<synchronous>, transform_indices = @transform_1, window_bounds = array<i64: 24, 512>}, {pipeline_mode = #tpu.pipeline_mode<synchronous>, transform_indices = @transform_2, window_bounds = array<i64: 1, 512>}, {pipeline_mode = #tpu.pipeline_mode<synchronous>, transform_indices = @transform_3, window_bounds = array<i64: 1, 512>}, {pipeline_mode = #tpu.pipeline_mode<synchronous>, transform_indices = @transform_4, window_bounds = array<i64: 512, 384>}, {pipeline_mode = #tpu.pipeline_mode<synchronous>, transform_indices = @transform_5, window_bounds = array<i64: 1, 384>}, {pipeline_mode = #tpu.pipeline_mode<synchronous>, transform_indices = @transform_6, window_bounds = array<i64: 384, 128>}, {pipeline_mode = #tpu.pipeline_mode<synchronous>, transform_indices = @transform_7, window_bounds = array<i64: 1, 128>}, {transform_indices = @transform_8, window_bounds = array<i64: 16, 128>}]} {
    %c0_i32 = arith.constant 0 : i32
    %0 = arith.cmpi eq, %arg0, %c0_i32 : i32
    %1 = arith.extui %0 : i1 to i32
    %c0_i32_0 = arith.constant 0 : i32
    %2 = arith.cmpi ne, %1, %c0_i32_0 : i32
    scf.if %2 {
      %c0_i32_2 = arith.constant 0 : i32
      %6 = arith.cmpi eq, %arg1, %c0_i32_2 : i32
      %7 = arith.extui %6 : i1 to i32
      %c0_i32_3 = arith.constant 0 : i32
      %8 = arith.cmpi ne, %7, %c0_i32_3 : i32
      scf.if %8 {
        %cst_19 = arith.constant 0.000000e+00 : f32
        %29 = vector.broadcast %cst_19 : f32 to vector<1x512xf32>
        %c0_20 = arith.constant 0 : index
        %c0_21 = arith.constant 0 : index
        %30 = vector.load %arg12[%c0_20, %c0_21] : memref<1x512xf32, #tpu.memory_space<vmem>>, vector<1x512xf32>
        tpu.vector_store %arg12[%c0_20, %c0_21], %29 {strides = array<i32>} : memref<1x512xf32, #tpu.memory_space<vmem>>, vector<1x512xf32>,
        %cst_22 = arith.constant 0.000000e+00 : f32
        %31 = vector.broadcast %cst_22 : f32 to vector<1x512xf32>
        %c0_23 = arith.constant 0 : index
        %c0_24 = arith.constant 0 : index
        %32 = vector.load %arg13[%c0_23, %c0_24] : memref<1x512xf32, #tpu.memory_space<vmem>>, vector<1x512xf32>
        tpu.vector_store %arg13[%c0_23, %c0_24], %31 {strides = array<i32>} : memref<1x512xf32, #tpu.memory_space<vmem>>, vector<1x512xf32>,
      } else {
      }
      %c0 = arith.constant 0 : index
      %c0_4 = arith.constant 0 : index
      %9 = vector.load %arg2[%c0, %c0_4] : memref<16x24xf32, #tpu.memory_space<vmem>>, vector<16x24xf32>
      %10 = arith.truncf %9 : vector<16x24xf32> to vector<16x24xbf16>
      %c0_5 = arith.constant 0 : index
      %c0_6 = arith.constant 0 : index
      %11 = vector.load %arg3[%c0_5, %c0_6] : memref<24x512xbf16, #tpu.memory_space<vmem>>, vector<24x512xbf16>
      %cst = arith.constant dense<0.000000e+00> : vector<16x512xf32>
      %12 = tpu.matmul %10, %11, %cst {dimension_numbers = #tpu.dot_dimension_numbers<[1], [0], [0], [1], [0, 0, 1, 1], [], []>} : vector<16x24xbf16>, vector<24x512xbf16>, vector<16x512xf32> -> vector<16x512xf32>
      %c0_7 = arith.constant 0 : index
      %c0_8 = arith.constant 0 : index
      %13 = vector.load %arg12[%c0_7, %c0_8] : memref<1x512xf32, #tpu.memory_space<vmem>>, vector<1x512xf32>
      %cst_9 = arith.constant dense<0.000000e+00> : vector<512xf32>
      %14 = vector.multi_reduction <add>, %12, %cst_9 [0] : vector<16x512xf32> to vector<512xf32>
      %15 = vector.shape_cast %14 : vector<512xf32> to vector<1x512xf32>
      %16 = arith.addf %13, %15 : vector<1x512xf32>
      %c0_10 = arith.constant 0 : index
      %c0_11 = arith.constant 0 : index
      %17 = vector.load %arg12[%c0_10, %c0_11] : memref<1x512xf32, #tpu.memory_space<vmem>>, vector<1x512xf32>
      tpu.vector_store %arg12[%c0_10, %c0_11], %16 {strides = array<i32>} : memref<1x512xf32, #tpu.memory_space<vmem>>, vector<1x512xf32>,
      %c0_12 = arith.constant 0 : index
      %c0_13 = arith.constant 0 : index
      %18 = vector.load %arg13[%c0_12, %c0_13] : memref<1x512xf32, #tpu.memory_space<vmem>>, vector<1x512xf32>
      %19 = arith.mulf %12, %12 : vector<16x512xf32>
      %cst_14 = arith.constant dense<0.000000e+00> : vector<512xf32>
      %20 = vector.multi_reduction <add>, %19, %cst_14 [0] : vector<16x512xf32> to vector<512xf32>
      %21 = vector.shape_cast %20 : vector<512xf32> to vector<1x512xf32>
      %22 = arith.addf %18, %21 : vector<1x512xf32>
      %c0_15 = arith.constant 0 : index
      %c0_16 = arith.constant 0 : index
      %23 = vector.load %arg13[%c0_15, %c0_16] : memref<1x512xf32, #tpu.memory_space<vmem>>, vector<1x512xf32>
      tpu.vector_store %arg13[%c0_15, %c0_16], %22 {strides = array<i32>} : memref<1x512xf32, #tpu.memory_space<vmem>>, vector<1x512xf32>,
      %24 = arith.truncf %12 : vector<16x512xf32> to vector<16x512xbf16>
      %25 = arith.index_cast %arg1 : i32 to index
      %c0_17 = arith.constant 0 : index
      %c0_18 = arith.constant 0 : index
      %26 = vector.load %arg11[%25, %c0_17, %c0_18] : memref<1x16x512xbf16, #tpu.memory_space<vmem>>, vector<1x16x512xbf16>
      %27 = vector.shape_cast %26 : vector<1x16x512xbf16> to vector<16x512xbf16>
      %28 = vector.shape_cast %24 : vector<16x512xbf16> to vector<1x16x512xbf16>
      tpu.vector_store %arg11[%25, %c0_17, %c0_18], %28 {strides = array<i32>} : memref<1x16x512xbf16, #tpu.memory_space<vmem>>, vector<1x16x512xbf16>,
    } else {
    }
    %c1_i32 = arith.constant 1 : i32
    %3 = arith.cmpi eq, %arg0, %c1_i32 : i32
    %4 = arith.extui %3 : i1 to i32
    %c0_i32_1 = arith.constant 0 : i32
    %5 = arith.cmpi ne, %4, %c0_i32_1 : i32
    scf.if %5 {
      %c0_i32_2 = arith.constant 0 : i32
      %6 = arith.cmpi eq, %arg1, %c0_i32_2 : i32
      %7 = arith.extui %6 : i1 to i32
      %c0_i32_3 = arith.constant 0 : i32
      %8 = arith.cmpi ne, %7, %c0_i32_3 : i32
      scf.if %8 {
        %c0_24 = arith.constant 0 : index
        %c0_25 = arith.constant 0 : index
        %43 = vector.load %arg12[%c0_24, %c0_25] : memref<1x512xf32, #tpu.memory_space<vmem>>, vector<1x512xf32>
        %cst_26 = arith.constant 6.250000e-02 : f32
        %44 = vector.broadcast %cst_26 : f32 to vector<1x512xf32>
        %45 = arith.mulf %43, %44 : vector<1x512xf32>
        %c0_27 = arith.constant 0 : index
        %c0_28 = arith.constant 0 : index
        %46 = vector.load %arg13[%c0_27, %c0_28] : memref<1x512xf32, #tpu.memory_space<vmem>>, vector<1x512xf32>
        %cst_29 = arith.constant 6.250000e-02 : f32
        %47 = vector.broadcast %cst_29 : f32 to vector<1x512xf32>
        %48 = arith.mulf %46, %47 : vector<1x512xf32>
        %49 = arith.mulf %45, %45 : vector<1x512xf32>
        %50 = arith.subf %48, %49 : vector<1x512xf32>
        %cst_30 = arith.constant 0.000000e+00 : f32
        %51 = vector.broadcast %cst_30 : f32 to vector<1x512xf32>
        %52 = arith.maximumf %50, %51 : vector<1x512xf32>
        %c0_31 = arith.constant 0 : index
        %c0_32 = arith.constant 0 : index
        %53 = vector.load %arg4[%c0_31, %c0_32] : memref<1x512xf32, #tpu.memory_space<vmem>>, vector<1x512xf32>
        %cst_33 = arith.constant 9.99999974E-6 : f32
        %54 = vector.broadcast %cst_33 : f32 to vector<1x512xf32>
        %55 = arith.addf %52, %54 : vector<1x512xf32>
        %56 = math.rsqrt %55 : vector<1x512xf32>
        %57 = arith.mulf %53, %56 : vector<1x512xf32>
        %c0_34 = arith.constant 0 : index
        %c0_35 = arith.constant 0 : index
        %58 = vector.load %arg14[%c0_34, %c0_35] : memref<1x512xf32, #tpu.memory_space<vmem>>, vector<1x512xf32>
        tpu.vector_store %arg14[%c0_34, %c0_35], %57 {strides = array<i32>} : memref<1x512xf32, #tpu.memory_space<vmem>>, vector<1x512xf32>,
        %c0_36 = arith.constant 0 : index
        %c0_37 = arith.constant 0 : index
        %59 = vector.load %arg5[%c0_36, %c0_37] : memref<1x512xf32, #tpu.memory_space<vmem>>, vector<1x512xf32>
        %60 = arith.mulf %45, %57 : vector<1x512xf32>
        %61 = arith.subf %59, %60 : vector<1x512xf32>
        %c0_38 = arith.constant 0 : index
        %c0_39 = arith.constant 0 : index
        %62 = vector.load %arg15[%c0_38, %c0_39] : memref<1x512xf32, #tpu.memory_space<vmem>>, vector<1x512xf32>
        tpu.vector_store %arg15[%c0_38, %c0_39], %61 {strides = array<i32>} : memref<1x512xf32, #tpu.memory_space<vmem>>, vector<1x512xf32>,
      } else {
      }
      %9 = arith.index_cast %arg1 : i32 to index
      %c0 = arith.constant 0 : index
      %c0_4 = arith.constant 0 : index
      %10 = vector.load %arg11[%9, %c0, %c0_4] : memref<1x16x512xbf16, #tpu.memory_space<vmem>>, vector<1x16x512xbf16>
      %11 = vector.shape_cast %10 : vector<1x16x512xbf16> to vector<16x512xbf16>
      %12 = arith.extf %11 : vector<16x512xbf16> to vector<16x512xf32>
      %c0_5 = arith.constant 0 : index
      %c0_6 = arith.constant 0 : index
      %13 = vector.load %arg14[%c0_5, %c0_6] : memref<1x512xf32, #tpu.memory_space<vmem>>, vector<1x512xf32>
      %14 = vector.broadcast %13 : vector<1x512xf32> to vector<16x512xf32>
      %15 = arith.mulf %12, %14 : vector<16x512xf32>
      %c0_7 = arith.constant 0 : index
      %c0_8 = arith.constant 0 : index
      %16 = vector.load %arg15[%c0_7, %c0_8] : memref<1x512xf32, #tpu.memory_space<vmem>>, vector<1x512xf32>
      %17 = vector.broadcast %16 : vector<1x512xf32> to vector<16x512xf32>
      %18 = arith.addf %15, %17 : vector<16x512xf32>
      %cst = arith.constant 0.000000e+00 : f32
      %19 = vector.broadcast %cst : f32 to vector<16x512xf32>
      %20 = arith.cmpf oge, %18, %19 : vector<16x512xf32>
      %cst_9 = arith.constant 0.00999999977 : f32
      %21 = vector.broadcast %cst_9 : f32 to vector<16x512xf32>
      %22 = arith.mulf %21, %18 : vector<16x512xf32>
      %23 = arith.select %20, %18, %22 : vector<16x512xi1>, vector<16x512xf32>
      %24 = arith.truncf %23 : vector<16x512xf32> to vector<16x512xbf16>
      %c0_10 = arith.constant 0 : index
      %c0_11 = arith.constant 0 : index
      %25 = vector.load %arg6[%c0_10, %c0_11] : memref<512x384xbf16, #tpu.memory_space<vmem>>, vector<512x384xbf16>
      %cst_12 = arith.constant dense<0.000000e+00> : vector<16x384xf32>
      %26 = tpu.matmul %24, %25, %cst_12 {dimension_numbers = #tpu.dot_dimension_numbers<[1], [0], [0], [1], [0, 0, 1, 1], [], []>} : vector<16x512xbf16>, vector<512x384xbf16>, vector<16x384xf32> -> vector<16x384xf32>
      %c0_13 = arith.constant 0 : index
      %c0_14 = arith.constant 0 : index
      %27 = vector.load %arg7[%c0_13, %c0_14] : memref<1x384xf32, #tpu.memory_space<vmem>>, vector<1x384xf32>
      %28 = vector.broadcast %27 : vector<1x384xf32> to vector<16x384xf32>
      %29 = arith.addf %26, %28 : vector<16x384xf32>
      %cst_15 = arith.constant 0.000000e+00 : f32
      %30 = vector.broadcast %cst_15 : f32 to vector<16x384xf32>
      %31 = arith.cmpf oge, %29, %30 : vector<16x384xf32>
      %cst_16 = arith.constant 0.00999999977 : f32
      %32 = vector.broadcast %cst_16 : f32 to vector<16x384xf32>
      %33 = arith.mulf %32, %29 : vector<16x384xf32>
      %34 = arith.select %31, %29, %33 : vector<16x384xi1>, vector<16x384xf32>
      %35 = arith.truncf %34 : vector<16x384xf32> to vector<16x384xbf16>
      %c0_17 = arith.constant 0 : index
      %c0_18 = arith.constant 0 : index
      %36 = vector.load %arg8[%c0_17, %c0_18] : memref<384x128xbf16, #tpu.memory_space<vmem>>, vector<384x128xbf16>
      %cst_19 = arith.constant dense<0.000000e+00> : vector<16x128xf32>
      %37 = tpu.matmul %35, %36, %cst_19 {dimension_numbers = #tpu.dot_dimension_numbers<[1], [0], [0], [1], [0, 0, 1, 1], [], []>} : vector<16x384xbf16>, vector<384x128xbf16>, vector<16x128xf32> -> vector<16x128xf32>
      %c0_20 = arith.constant 0 : index
      %c0_21 = arith.constant 0 : index
      %38 = vector.load %arg9[%c0_20, %c0_21] : memref<1x128xf32, #tpu.memory_space<vmem>>, vector<1x128xf32>
      %39 = vector.broadcast %38 : vector<1x128xf32> to vector<16x128xf32>
      %40 = arith.addf %37, %39 : vector<16x128xf32>
      %41 = math.tanh %40 : vector<16x128xf32>
      %c0_22 = arith.constant 0 : index
      %c0_23 = arith.constant 0 : index
      %42 = vector.load %arg10[%c0_22, %c0_23] : memref<16x128xf32, #tpu.memory_space<vmem>>, vector<16x128xf32>
      tpu.vector_store %arg10[%c0_22, %c0_23], %41 {strides = array<i32>} : memref<16x128xf32, #tpu.memory_space<vmem>>, vector<16x128xf32>,
    } else {
    }
    return
  }
  func.func @transform_0(%arg0: i32, %arg1: i32) -> (i32, i32) {
    %c1_i32 = arith.constant 1 : i32
    %0 = arith.subi %c1_i32, %arg0 : i32
    %1 = arith.muli %arg1, %0 : i32
    %c0_i32 = arith.constant 0 : i32
    %c0_i32_0 = arith.constant 0 : i32
    return %1, %c0_i32 : i32, i32
  }
  func.func @transform_1(%arg0: i32, %arg1: i32) -> (i32, i32) {
    %c0_i32 = arith.constant 0 : i32
    %c0_i32_0 = arith.constant 0 : i32
    %c0_i32_1 = arith.constant 0 : i32
    return %c0_i32, %c0_i32_0 : i32, i32
  }
  func.func @transform_2(%arg0: i32, %arg1: i32) -> (i32, i32) {
    %c0_i32 = arith.constant 0 : i32
    %c0_i32_0 = arith.constant 0 : i32
    %c0_i32_1 = arith.constant 0 : i32
    return %c0_i32, %c0_i32_0 : i32, i32
  }
  func.func @transform_3(%arg0: i32, %arg1: i32) -> (i32, i32) {
    %c0_i32 = arith.constant 0 : i32
    %c0_i32_0 = arith.constant 0 : i32
    %c0_i32_1 = arith.constant 0 : i32
    return %c0_i32, %c0_i32_0 : i32, i32
  }
  func.func @transform_4(%arg0: i32, %arg1: i32) -> (i32, i32) {
    %c0_i32 = arith.constant 0 : i32
    %c0_i32_0 = arith.constant 0 : i32
    %c0_i32_1 = arith.constant 0 : i32
    return %c0_i32, %c0_i32_0 : i32, i32
  }
  func.func @transform_5(%arg0: i32, %arg1: i32) -> (i32, i32) {
    %c0_i32 = arith.constant 0 : i32
    %c0_i32_0 = arith.constant 0 : i32
    %c0_i32_1 = arith.constant 0 : i32
    return %c0_i32, %c0_i32_0 : i32, i32
  }
  func.func @transform_6(%arg0: i32, %arg1: i32) -> (i32, i32) {
    %c0_i32 = arith.constant 0 : i32
    %c0_i32_0 = arith.constant 0 : i32
    %c0_i32_1 = arith.constant 0 : i32
    return %c0_i32, %c0_i32_0 : i32, i32
  }
  func.func @transform_7(%arg0: i32, %arg1: i32) -> (i32, i32) {
    %c0_i32 = arith.constant 0 : i32
    %c0_i32_0 = arith.constant 0 : i32
    %c0_i32_1 = arith.constant 0 : i32
    return %c0_i32, %c0_i32_0 : i32, i32
  }
  func.func @transform_8(%arg0: i32, %arg1: i32) -> (i32, i32) {
    %0 = arith.muli %arg1, %arg0 : i32
    %c0_i32 = arith.constant 0 : i32
    %c0_i32_0 = arith.constant 0 : i32
    return %0, %c0_i32 : i32, i32
  }
}

</mosaic_0001>

<bundles_post_ra>
// kernel: tpu_custom_call.1
= control target key start
LH: loop header
LB: loop body
LE: loop exit
PB: predicated region body
PF: predicated region fallthrough
CT: control target
= control target key end

     0   :  { %13 = vsyncpa [#allocation8], 0  ;;  %s3280_s0 = inlined_call_operand.hbm [shape: f32[16,24], index: 0, kind: input, shape index: {}]   ;;  %s3281_s1 = inlined_call_operand.hbm [shape: bf16[24,512], index: 1, kind: input, shape index: {}]   ;;  %s3282_s2 = inlined_call_operand.hbm [shape: f32[1,512], index: 2, kind: input, shape index: {}]   ;;  %s3283_s3 = inlined_call_operand.hbm [shape: f32[1,512], index: 3, kind: input, shape index: {}]   ;;  %s3284_s4 = inlined_call_operand.hbm [shape: bf16[512,384], index: 4, kind: input, shape index: {}]   ;;  %s3285_s5 = inlined_call_operand.vmem [shape: f32[1,384], index: 5, kind: input, shape index: {}]   ;;  %s3286_s6 = inlined_call_operand.hbm [shape: bf16[384,128], index: 6, kind: input, shape index: {}]   ;;  %s3287_s7 = inlined_call_operand.vmem [shape: f32[1,128], index: 7, kind: input, shape index: {}]   ;;  %s3288_s8 = inlined_call_operand.hbm [shape: f32[16,128], index: 8, kind: output, shape index: {}]  }
   0x1   :  { %15 = vsyncpa [#allocation8 + $0x1], 0 }
   0x2   :  { %16 = vsyncpa [#allocation11], 0 }
   0x3   :  { %17 = vsyncpa [#allocation14], 0 }
   0x4   :  { %18 = vsyncpa [#allocation17], 0 }
   0x5   :  { %19 = vsyncpa [#allocation9], 0 }
   0x6   :  { %21 = vsyncpa [#allocation9 + $0x1], 0  ;;  %s3091_s27 = smov 0   ;;  %s3093_s28 = smov 0  }
   0x7   :  { %s3095_s29 = smov 0  }
   0x8 LB: > { %s3289_s30 = sadd.s32 4294967295, %s3026_s29   ;;  %s39_s10 = sadd.s32 1, %s3022_s28  ;;  %s3026_s29 = sphi %s3095_s29, %s27_s29   ;;  %s3022_s28 = sphi %s3093_s28, %s3302_s28   ;;  %s3018_s27 = sphi %s3091_s27, %s3301_s27  }
   0x9   : > { %p2014_p0 = scmp.ge.s32.totalorder %s3026_s29, 1  ;;  %p41_p1 = scmp.ge.s32.totalorder %s39_s10, 2 }
   0xa   : > { %p249_p2 = scmp.lt.s32.totalorder %s3026_s29, 3  ;;  %p3113_p3 = scmp.eq.s32.totalorder %s3289_s30, 0 }
   0xb   : > { %s3304_s10 = smov (%p41_p1, %s39_s10), 0  ;;  %s260_s15 = sshll.u32 %s3281_s1, 4  ;;  %s261_s15 = int_to_ptr.hbm [resolvable:$true] %s260_s15 }
   0xc   : > { %p3119_p4 = pnand %p2014_p0, %p249_p2  ;;  %s3028_s16 = smov [#allocation10]  }
   0xd   : > { %s262_s17 = sshll.u32 %s3028_s16, 4  ;;  %p2020_p7 = scmp.ge.s32.totalorder %s3026_s29, 2  ;;  %s263_s17 = int_to_ptr.vmem [resolvable:$true] %s262_s17 }
   0xe   : > { %p2687_p5 = pneg %p3119_p4  ;;  %s287_s21 = sshll.u32 %s3283_s3, 4  ;;  %s288_s21 = int_to_ptr.hbm [resolvable:$true] %s287_s21 }
   0xf   : > { %s3029_s22 = smov 256   ;;  %s3030_s23 = smov 16  }
  0x10   : > { %p3130_p6 = pnand %p3113_p3, %p2687_p5  ;;  %s3031_s24 = smov [#allocation13]  }
  0x11   : > { %s289_s25 = sshll.u32 %s3031_s24, 4  ;;  %s275_s14 = sshll.u32 %s3282_s2, 4  ;;  %s290_s25 = int_to_ptr.vmem [resolvable:$true] %s289_s25  ;;  %s276_s14 = int_to_ptr.hbm [resolvable:$true] %s275_s14 }
  0x12   : > { %2690 = dma.hbm_to_vmem [thread:$0]  (!%p3130_p6), %s261_s15, 768, %s263_s17, [#allocation11], %s3029_s22, %s3029_s22, %s3030_s23  }
  0x13   : > { %2696 = dma.hbm_to_vmem [thread:$0]  (!%p3130_p6), %s288_s21, 64, %s290_s25, [#allocation14]  }
  0x14   : > { %s298_s20 = sshll.u32 %s3284_s4, 4  ;;  %s3032_s9 = smov [#allocation12]   ;;  %s299_s20 = int_to_ptr.hbm [resolvable:$true] %s298_s20 }
  0x15   : > { %s277_s30 = sshll.u32 %s3032_s9, 4  ;;  %s3033_s15 = smov [#allocation15]   ;;  %s278_s30 = int_to_ptr.vmem [resolvable:$true] %s277_s30 }
  0x16   : > { %2693 = dma.hbm_to_vmem [thread:$0]  (!%p3130_p6), %s276_s14, 64, %s278_s30, [#allocation11]  }
  0x17   : > { %s300_s17 = sshll.u32 %s3033_s15, 4  ;;  %s3034_s22 = smov 192   ;;  %s301_s17 = int_to_ptr.vmem [resolvable:$true] %s300_s17 }
  0x18   : > { %s3035_s23 = smov 12   ;;  %s315_s25 = sshll.u32 %s3286_s6, 4  ;;  %s316_s25 = int_to_ptr.hbm [resolvable:$true] %s315_s25 }
  0x19   : > { %2699 = dma.hbm_to_vmem [thread:$0]  (!%p3130_p6), %s299_s20, 12288, %s301_s17, [#allocation14], %s3034_s22, %s3034_s22, %s3035_s23  }
  0x1a   : > { %s3036_s26 = smov [#allocation16]   ;;  %p2716_p8 = scmp.lt.s32.totalorder %s3026_s29, 2 }
  0x1b   : > { %s317_s9 = sshll.u32 %s3036_s26, 4  ;;  %s3037_s13 = smov 64   ;;  %s318_s9 = int_to_ptr.vmem [resolvable:$true] %s317_s9 }
  0x1c   : > { %s3038_s16 = smov 4   ;;  %p2717_p9 = scmp.eq.s32.totalorder %s3026_s29, 0 }
  0x1d   : > { %2702 = dma.hbm_to_vmem [thread:$0]  (!%p3130_p6), %s316_s25, 3072, %s318_s9, [#allocation17], %s3037_s13, %s3037_s13, %s3038_s16  }
  0x1e   : > { %s346_s19 = sshll.u32 %s3280_s0, 4  ;;  %s3039_s20 = smov [#allocation7]   ;;  %s347_s19 = int_to_ptr.hbm [resolvable:$true] %s346_s19 }
  0x1f   : > { %s348_s15 = sshll.u32 %s3039_s20, 4  ;;  %p2704_p10 = pnand %p2717_p9, %p2716_p8  ;;  %s349_s15 = int_to_ptr.vmem [resolvable:$true] %s348_s15 }
  0x20   : > { %s3040_s17 = smov 128   ;;  %s3041_s22 = smov 8  }
  0x21   : > { %2706 = dma.hbm_to_vmem [thread:$0]  (!%p2704_p10), %s347_s19, 256, %s349_s15, [#allocation8], %s3040_s17, %s3040_s17, %s3041_s22  }
  0x22   : > { %360 = sbr.rel (%p3119_p4) target bundleno = 656 (0x290), region = 52 }
  0x27   : > { %2997 = dma.done.wait (%p3113_p3), [#allocation8], 256  }
  0x28   : > { %2999 = vsyncadd (%p3113_p3), [#allocation8], 4294967040 }
  0x29   : > { %3001 = dma.done.wait (%p3113_p3), [#allocation11], 832  }
  0x2a   : > { %3003 = vsyncadd (%p3113_p3), [#allocation11], 4294966464 }
  0x2b   : > { %3005 = dma.done.wait (%p3113_p3), [#allocation14], 12352  }
  0x2c   : > { %3007 = vsyncadd (%p3113_p3), [#allocation14], 4294954944 }
  0x2d   : > { %3009 = dma.done.wait (%p3113_p3), [#allocation17], 3072  }
  0x2e   : > { %3011 = vsyncadd (%p3113_p3), [#allocation17], 4294964224  ;;  %p2029_p11 = scmp.ne.s32.totalorder %s3018_s27, 0 }
  0x30   : > { %434 = sbr.rel (%p2029_p11) target bundleno = 230 (0xe6), region = 80 }
  0x35   : > { %v452_v0 = vld [vmem:[#allocation10 + $0x20] sm:$0xff]  ;;  %v453_v1 = vld [vmem:[#allocation10 + $0x28] sm:$0xff]  ;;  %vm488_vm0 = vcmask 1043456   ;;  %v2537_v7 = vld [vmem:[#allocation10 + $0xc] sm:$0xf0]  ;;  %vm484_vm1 = vcmask 195584   ;;  %v439_v29 = vlaneseq }
  0x36   : > { %v468_v2 = vunpack.c.l.b16 %v452_v0  ;;  %v469_v3 = vunpack.c.h.b16 %v452_v0  ;;  %v470_v4 = vunpack.c.l.b16 %v453_v1  ;;  %v471_v5 = vunpack.c.h.b16 %v453_v1  ;;  %v2032_v6 = vld [vmem:[#allocation10] sm:$0xf]  ;;  %v2535_v12 = vld [vmem:[#allocation10 + $0x4] sm:$0xf]  ;;  %v2034_v13 = vld [vmem:[#allocation10 + $0x10] sm:$0xf0] }
  0x37   : > { %v2040_v14 = vld [vmem:[#allocation10 + $0x8] sm:$0xf]  ;;  %v2538_v15 = vld [vmem:[#allocation10 + $0x14] sm:$0xf0]  ;;  %v2536_v16 = vld [vmem:[#allocation10 + $0xc] sm:$0xf]  ;;  %v2033_v22 = vor.u32 %v2537_v7, %v2032_v6  ;;  %v2037_v23 = vor.u32 %v2535_v12, %v2034_v13 }
  0x38   : > { %v476_v8 = vpack.c.b16 %v468_v2, %v468_v2  ;;  %v477_v9 = vpack.c.b16 %v469_v3, %v469_v3  ;;  %v478_v10 = vpack.c.b16 %v470_v4, %v470_v4  ;;  %v479_v11 = vpack.c.b16 %v471_v5, %v471_v5  ;;  %v2042_v17 = vld [vmem:[#allocation10 + $0x18] sm:$0xf0]  ;;  %v445_v24 = vld [vmem:[#allocation7] sm:$0xff]  ;;  %v446_v25 = vld [vmem:[#allocation7 + $0x8] sm:$0xff] }
  0x39   : > { %v2041_v26 = vor.u32 %v2538_v15, %v2040_v14  ;;  %v2045_v27 = vor.u32 %v2536_v16, %v2042_v17  ;;  %v447_v28 = vpack.c.bf16 %v446_v25, %v445_v24  ;;  %vm3185_vm2 = vcmp.lt.s32.totalorder %v439_v29, 512 }
  0x3a   : > { %v490_v18 = vsel %vm488_vm0, %v476_v8, 0  ;;  %v493_v19 = vsel %vm488_vm0, %v477_v9, 0  ;;  %v496_v20 = vsel %vm488_vm0, %v478_v10, 0  ;;  %v499_v21 = vsel %vm488_vm0, %v479_v11, 0 }
  0x3b   : > { %507 = vmatpush.bf16.msra.mxu0 %v490_v18  ;;  %521 = vmatpush.bf16.msra.mxu1 %v493_v19  ;;  %v3042_v31 = vmov 0.0   ;;  %vm593_vm3 = vcmask 1040384   ;;  %vm595_vm4 = vcmask 1042434   ;;  %vm597_vm5 = vcmask 1041408  }
  0x3c   : > { %535 = vmatpush.bf16.msra.mxu2 %v496_v20  ;;  %549 = vmatpush.bf16.msra.mxu3 %v499_v21  ;;  %443 = vst.msk [vmem:[#allocation3] sm:$0xf] %vm3185_vm2, %v3042_v31 }
  0x3d   : > { %444 = vst.msk [vmem:[#allocation4] sm:$0xf] %vm3185_vm2, %v3042_v31 }
  0x3f   : > { %508 = vmatpush.bf16.msra.mxu0 %v2033_v22  ;;  %522 = vmatpush.bf16.msra.mxu1 %v2037_v23 }
  0x40   : > { %536 = vmatpush.bf16.msra.mxu2 %v2041_v26  ;;  %550 = vmatpush.bf16.msra.mxu3 %v2045_v27 }
  0x42   : > { %2046 = vmatmul.msk.bf16.vlgmr.msra.gmra.mxu0 %vm484_vm1, %v447_v28  ;;  %2047 = vmatmul.msk.bf16.vlgmr.msra.gmra.mxu1 %vm484_vm1, %v447_v28 }
  0x43   : > { %2048 = vmatmul.msk.bf16.vlgmr.msra.gmra.mxu2 %vm484_vm1, %v447_v28  ;;  %2049 = vmatmul.msk.bf16.vlgmr.msra.gmra.mxu3 %vm484_vm1, %v447_v28 }
  0xbf   : > { %v510_v32 = vpop.f32.mrf.mxu0  ;;  %v524_v33 = vpop.f32.mrf.mxu1 }
  0xc0   : > { %v656_v34 = vpack.c.bf16 %v524_v33, %v510_v32  ;;  %v607_v35 = vmul.f32 %v510_v32, %v510_v32  ;;  %v608_v38 = vmul.f32 %v524_v33, %v524_v33 }
  0xc2   : > { %663 = vst [vmem:[#allocation2 + $0x10] sm:$0xff] %v656_v34 }
  0xc6   : > { %v538_v36 = vpop.f32.mrf.mxu2  ;;  %v552_v37 = vpop.f32.mrf.mxu3 }
  0xc7   : > { %v657_v39 = vpack.c.bf16 %v552_v37, %v538_v36  ;;  %v512_v40 = vpop.f32.mrf.mxu0  ;;  %v526_v41 = vpop.f32.mrf.mxu1  ;;  %v609_v55 = vmul.f32 %v538_v36, %v538_v36  ;;  %v610_v56 = vmul.f32 %v552_v37, %v552_v37 }
  0xc8   : > { %v558_v42 = vadd.f32 %v512_v40, %v510_v32  ;;  %v611_v43 = vmul.f32 %v512_v40, %v512_v40  ;;  %v565_v44 = vadd.f32 %v526_v41, %v524_v33  ;;  %v612_v45 = vmul.f32 %v526_v41, %v526_v41 }
  0xc9   : > { %664 = vst [vmem:[#allocation2] sm:$0xff] %v657_v39  ;;  %v658_v46 = vpack.c.bf16 %v526_v41, %v512_v40 }
  0xca   : > { %v559_v47 = vrot.slane %v558_v42, 4  ;;  %v615_v48 = vadd.f32 %v611_v43, %v607_v35  ;;  %v566_v49 = vrot.slane %v565_v44, 4  ;;  %v622_v50 = vadd.f32 %v612_v45, %v608_v38 }
  0xcb   : > { %665 = vst [vmem:[#allocation2 + $0x18] sm:$0xff] %v658_v46 }
  0xcc   : > { %v560_v51 = vadd.f32 %v559_v47, %v558_v42  ;;  %v616_v52 = vrot.slane %v615_v48, 4  ;;  %v567_v53 = vadd.f32 %v566_v49, %v565_v44  ;;  %v623_v54 = vrot.slane %v622_v50, 4  ;;  %v557_v49 = vld [vmem:[#allocation3] sm:$0xf] }
  0xce   : > { %v617_v57 = vadd.f32 %v616_v52, %v615_v48  ;;  %v568_v58 = vrot.slane %v567_v53, 2  ;;  %v624_v59 = vadd.f32 %v623_v54, %v622_v50  ;;  %v540_v60 = vpop.f32.mrf.mxu2  ;;  %v554_v61 = vpop.f32.mrf.mxu3  ;;  %v561_v2 = vrot.slane %v560_v51, 2 }
  0xcf   : > { %v572_v62 = vadd.f32 %v540_v60, %v538_v36  ;;  %v613_v63 = vmul.f32 %v540_v60, %v540_v60  ;;  %v579_v0 = vadd.f32 %v554_v61, %v552_v37  ;;  %v614_v1 = vmul.f32 %v554_v61, %v554_v61 }
  0xd0   : > { %v569_v3 = vadd.f32 %v568_v58, %v567_v53  ;;  %v625_v4 = vrot.slane %v624_v59, 2  ;;  %v618_v9 = vrot.slane %v617_v57, 2  ;;  %v562_v16 = vadd.f32 %v561_v2, %v560_v51 }
  0xd1   : > { %v573_v5 = vrot.slane %v572_v62, 4  ;;  %v629_v6 = vadd.f32 %v613_v63, %v609_v55  ;;  %v580_v7 = vrot.slane %v579_v0, 4  ;;  %v636_v8 = vadd.f32 %v614_v1, %v610_v56  ;;  %v606_v55 = vld [vmem:[#allocation4] sm:$0xf] }
  0xd2   : > { %v570_v10 = vrot.slane %v569_v3, 1  ;;  %v626_v11 = vadd.f32 %v625_v4, %v624_v59  ;;  %v619_v22 = vadd.f32 %v618_v9, %v617_v57  ;;  %v659_v24 = vpack.c.bf16 %v554_v61, %v540_v60 }
  0xd3   : > { %v574_v12 = vadd.f32 %v573_v5, %v572_v62  ;;  %v630_v13 = vrot.slane %v629_v6, 4  ;;  %v581_v14 = vadd.f32 %v580_v7, %v579_v0  ;;  %v637_v15 = vrot.slane %v636_v8, 4 }
  0xd4   : > { %v627_v17 = vrot.slane %v626_v11, 1  ;;  %v571_v23 = vadd.f32 %v570_v10, %v569_v3  ;;  %v563_v29 = vrot.slane %v562_v16, 1  ;;  %666 = vst [vmem:[#allocation2 + $0x8] sm:$0xff] %v659_v24  ;;  %v620_v36 = vrot.slane %v619_v22, 1 }
  0xd5   : > { %v575_v18 = vrot.slane %v574_v12, 2  ;;  %v631_v19 = vadd.f32 %v630_v13, %v629_v6  ;;  %v582_v20 = vrot.slane %v581_v14, 2  ;;  %v638_v21 = vadd.f32 %v637_v15, %v636_v8 }
  0xd6   : > { %v628_v31 = vadd.f32 %v627_v17, %v626_v11  ;;  %v590_v37 = vrot.slane %v571_v23, 7  ;;  %v564_v42 = vadd.f32 %v563_v29, %v562_v16  ;;  %v621_v48 = vadd.f32 %v620_v36, %v619_v22 }
  0xd7   : > { %v576_v25 = vadd.f32 %v575_v18, %v574_v12  ;;  %v632_v26 = vrot.slane %v631_v19, 2  ;;  %v583_v27 = vadd.f32 %v582_v20, %v581_v14  ;;  %v639_v28 = vrot.slane %v638_v21, 2 }
  0xd8   : > { %v647_v43 = vrot.slane %v628_v31, 7  ;;  %v594_v50 = vsel %vm593_vm3, %v564_v42, %v590_v37 }
  0xd9   : > { %v577_v32 = vrot.slane %v576_v25, 1  ;;  %v633_v33 = vadd.f32 %v632_v26, %v631_v19  ;;  %v584_v34 = vrot.slane %v583_v27, 1  ;;  %v640_v35 = vadd.f32 %v639_v28, %v638_v21 }
  0xda   : > { %v650_v56 = vsel %vm593_vm3, %v621_v48, %v647_v43 }
  0xdb   : > { %v578_v38 = vadd.f32 %v577_v32, %v576_v25  ;;  %v634_v39 = vrot.slane %v633_v33, 1  ;;  %v585_v40 = vadd.f32 %v584_v34, %v583_v27  ;;  %v641_v41 = vrot.slane %v640_v35, 1 }
  0xdd   : > { %v591_v44 = vrot.slane %v578_v38, 6  ;;  %v635_v45 = vadd.f32 %v634_v39, %v633_v33  ;;  %v592_v46 = vrot.slane %v585_v40, 5  ;;  %v642_v47 = vadd.f32 %v641_v41, %v640_v35 }
  0xdf   : > { %v648_v51 = vrot.slane %v635_v45, 6  ;;  %v596_v52 = vsel %vm595_vm4, %v591_v44, %v592_v46  ;;  %v649_v53 = vrot.slane %v642_v47, 5 }
  0xe0   : > { %v598_v54 = vsel %vm597_vm5, %v594_v50, %v596_v52 }
  0xe1   : > { %v600_v57 = vadd.f32 %v598_v54, %v557_v49  ;;  %v651_v58 = vsel %vm595_vm4, %v648_v51, %v649_v53 }
  0xe2   : > { %v652_v59 = vsel %vm597_vm5, %v650_v56, %v651_v58 }
  0xe3   : > { %605 = vst.msk [vmem:[#allocation3] sm:$0xf] %vm3185_vm2, %v600_v57  ;;  %v654_v60 = vadd.f32 %v652_v59, %v606_v55 }
  0xe5   : > { %655 = vst.msk [vmem:[#allocation4] sm:$0xf] %vm3185_vm2, %v654_v60 }
  0xe6 PF: > { %p2050_p12 = scmp.ne.s32.totalorder %s3018_s27, 1 }
  0xe8   : > { %670 = sbr.rel (%p2050_p12) target bundleno = 651 (0x28b), region = 88 }
  0xed   : > { %v2137_v61 = vld [vmem:[#allocation15 + $0xa8] sm:$0xf]  ;;  %v2561_v62 = vld [vmem:[#allocation15 + $0xb0] sm:$0xf0]  ;;  %v2125_v8 = vld [vmem:[#allocation15 + $0x90] sm:$0xf] }
  0xee   : > { %v2233_v63 = vld [vmem:[#allocation15 + $0x168] sm:$0xf]  ;;  %v2138_v0 = vor.u32 %v2561_v62, %v2137_v61  ;;  %v2585_v1 = vld [vmem:[#allocation15 + $0x170] sm:$0xf0]  ;;  %v2558_v30 = vld [vmem:[#allocation15 + $0x98] sm:$0xf0] }
  0xef   : > { %v2329_v2 = vld [vmem:[#allocation15 + $0x228] sm:$0xf]  ;;  %v2609_v3 = vld [vmem:[#allocation15 + $0x230] sm:$0xf0]  ;;  %v2234_v4 = vor.u32 %v2585_v1, %v2233_v63  ;;  %v2221_v10 = vld [vmem:[#allocation15 + $0x150] sm:$0xf]  ;;  %v2126_v12 = vor.u32 %v2558_v30, %v2125_v8 }
  0xf0   : > { %v2330_v5 = vor.u32 %v2609_v3, %v2329_v2  ;;  %v2425_v6 = vld [vmem:[#allocation15 + $0x2e8] sm:$0xf]  ;;  %v2633_v7 = vld [vmem:[#allocation15 + $0x2f0] sm:$0xf0]  ;;  %1431 = vmatpush.bf16.msra.mxu0 %v2138_v0  ;;  %v2582_v11 = vld [vmem:[#allocation15 + $0x158] sm:$0xf0] }
  0xf1   : > { %v2426_v9 = vor.u32 %v2633_v7, %v2425_v6  ;;  %1445 = vmatpush.bf16.msra.mxu1 %v2234_v4  ;;  %v2222_v13 = vor.u32 %v2582_v11, %v2221_v10  ;;  %v2317_v14 = vld [vmem:[#allocation15 + $0x210] sm:$0xf]  ;;  %v2606_v15 = vld [vmem:[#allocation15 + $0x218] sm:$0xf0]  ;;  %v2113_v19 = vld [vmem:[#allocation15 + $0x78] sm:$0xf] }
  0xf2   : > { %1459 = vmatpush.bf16.msra.mxu2 %v2330_v5  ;;  %v2413_v16 = vld [vmem:[#allocation15 + $0x2d0] sm:$0xf]  ;;  %v2318_v17 = vor.u32 %v2606_v15, %v2317_v14  ;;  %v2630_v18 = vld [vmem:[#allocation15 + $0x2d8] sm:$0xf0]  ;;  %v2555_v20 = vld [vmem:[#allocation15 + $0x80] sm:$0xf0] }
  0xf3   : > { %1473 = vmatpush.bf16.msra.mxu3 %v2426_v9  ;;  %v2414_v21 = vor.u32 %v2630_v18, %v2413_v16  ;;  %v2209_v22 = vld [vmem:[#allocation15 + $0x138] sm:$0xf]  ;;  %v2579_v23 = vld [vmem:[#allocation15 + $0x140] sm:$0xf0]  ;;  %v2114_v25 = vor.u32 %v2555_v20, %v2113_v19  ;;  %v2101_v32 = vld [vmem:[#allocation15 + $0x60] sm:$0xf] }
  0xf4   : > { %v2305_v24 = vld [vmem:[#allocation15 + $0x1f8] sm:$0xf]  ;;  %1432 = vmatpush.bf16.msra.mxu0 %v2126_v12  ;;  %v2603_v26 = vld [vmem:[#allocation15 + $0x200] sm:$0xf0]  ;;  %v2210_v29 = vor.u32 %v2579_v23, %v2209_v22  ;;  %v2552_v33 = vld [vmem:[#allocation15 + $0x68] sm:$0xf0] }
  0xf5   : > { %v2401_v27 = vld [vmem:[#allocation15 + $0x2b8] sm:$0xf]  ;;  %v2627_v28 = vld [vmem:[#allocation15 + $0x2c0] sm:$0xf0]  ;;  %1446 = vmatpush.bf16.msra.mxu1 %v2222_v13  ;;  %v2306_v31 = vor.u32 %v2603_v26, %v2305_v24  ;;  %v2197_v34 = vld [vmem:[#allocation15 + $0x120] sm:$0xf]  ;;  %v2102_v41 = vor.u32 %v2552_v33, %v2101_v32 }
  0xf6   : > { %1460 = vmatpush.bf16.msra.mxu2 %v2318_v17  ;;  %v2402_v35 = vor.u32 %v2627_v28, %v2401_v27  ;;  %v2576_v36 = vld [vmem:[#allocation15 + $0x128] sm:$0xf0]  ;;  %v2293_v37 = vld [vmem:[#allocation15 + $0x1e0] sm:$0xf]  ;;  %v2089_v44 = vld [vmem:[#allocation15 + $0x48] sm:$0xf] }
  0xf7   : > { %1474 = vmatpush.bf16.msra.mxu3 %v2414_v21  ;;  %v2600_v38 = vld [vmem:[#allocation15 + $0x1e8] sm:$0xf0]  ;;  %v2389_v39 = vld [vmem:[#allocation15 + $0x2a0] sm:$0xf]  ;;  %v2198_v42 = vor.u32 %v2576_v36, %v2197_v34  ;;  %v2549_v45 = vld [vmem:[#allocation15 + $0x50] sm:$0xf0] }
  0xf8   : > { %v2624_v40 = vld [vmem:[#allocation15 + $0x2a8] sm:$0xf0]  ;;  %1433 = vmatpush.bf16.msra.mxu0 %v2114_v25  ;;  %v2294_v43 = vor.u32 %v2600_v38, %v2293_v37  ;;  %v2185_v46 = vld [vmem:[#allocation15 + $0x108] sm:$0xf]  ;;  %v2573_v48 = vld [vmem:[#allocation15 + $0x110] sm:$0xf0]  ;;  %v2090_v53 = vor.u32 %v2549_v45, %v2089_v44 }
  0xf9   : > { %1447 = vmatpush.bf16.msra.mxu1 %v2210_v29  ;;  %v2390_v47 = vor.u32 %v2624_v40, %v2389_v39  ;;  %v2281_v49 = vld [vmem:[#allocation15 + $0x1c8] sm:$0xf]  ;;  %v2597_v50 = vld [vmem:[#allocation15 + $0x1d0] sm:$0xf0]  ;;  %v2186_v54 = vor.u32 %v2573_v48, %v2185_v46  ;;  %v2077_v56 = vld [vmem:[#allocation15 + $0x30] sm:$0xf] }
  0xfa   : > { %1461 = vmatpush.bf16.msra.mxu2 %v2306_v31  ;;  %v2377_v51 = vld [vmem:[#allocation15 + $0x288] sm:$0xf]  ;;  %v2621_v52 = vld [vmem:[#allocation15 + $0x290] sm:$0xf0]  ;;  %v2282_v55 = vor.u32 %v2597_v50, %v2281_v49  ;;  %v2546_v57 = vld [vmem:[#allocation15 + $0x38] sm:$0xf0] }
  0xfb   : > { %1475 = vmatpush.bf16.msra.mxu3 %v2402_v35  ;;  %v2173_v58 = vld [vmem:[#allocation15 + $0xf0] sm:$0xf]  ;;  %v2378_v59 = vor.u32 %v2621_v52, %v2377_v51  ;;  %v2570_v60 = vld [vmem:[#allocation15 + $0xf8] sm:$0xf0]  ;;  %v2078_v1 = vor.u32 %v2546_v57, %v2077_v56  ;;  %v2065_v4 = vld [vmem:[#allocation15 + $0x18] sm:$0xf] }
  0xfc   : > { %1434 = vmatpush.bf16.msra.mxu0 %v2102_v41  ;;  %v2269_v61 = vld [vmem:[#allocation15 + $0x1b0] sm:$0xf]  ;;  %v2594_v62 = vld [vmem:[#allocation15 + $0x1b8] sm:$0xf0]  ;;  %v2174_v2 = vor.u32 %v2570_v60, %v2173_v58  ;;  %v2543_v5 = vld [vmem:[#allocation15 + $0x20] sm:$0xf0] }
  0xfd   : > { %1448 = vmatpush.bf16.msra.mxu1 %v2198_v42  ;;  %v2365_v63 = vld [vmem:[#allocation15 + $0x270] sm:$0xf]  ;;  %v2618_v0 = vld [vmem:[#allocation15 + $0x278] sm:$0xf0]  ;;  %v2270_v3 = vor.u32 %v2594_v62, %v2269_v61  ;;  %v2161_v6 = vld [vmem:[#allocation15 + $0xd8] sm:$0xf]  ;;  %v2066_v12 = vor.u32 %v2543_v5, %v2065_v4 }
  0xfe   : > { %1462 = vmatpush.bf16.msra.mxu2 %v2294_v43  ;;  %v2366_v7 = vor.u32 %v2618_v0, %v2365_v63  ;;  %v2567_v8 = vld [vmem:[#allocation15 + $0xe0] sm:$0xf0]  ;;  %v2257_v9 = vld [vmem:[#allocation15 + $0x198] sm:$0xf]  ;;  %v2053_v13 = vld [vmem:[#allocation15] sm:$0xf] }
  0xff   : > { %1476 = vmatpush.bf16.msra.mxu3 %v2390_v47  ;;  %v2591_v30 = vld [vmem:[#allocation15 + $0x1a0] sm:$0xf0]  ;;  %v2353_v10 = vld [vmem:[#allocation15 + $0x258] sm:$0xf]  ;;  %v2540_v14 = vld [vmem:[#allocation15 + $0x8] sm:$0xf0]  ;;  %v2162_v15 = vor.u32 %v2567_v8, %v2161_v6 }
 0x100   : > { %1435 = vmatpush.bf16.msra.mxu0 %v2090_v53  ;;  %v2615_v11 = vld [vmem:[#allocation15 + $0x260] sm:$0xf0]  ;;  %v2258_v16 = vor.u32 %v2591_v30, %v2257_v9  ;;  %v2149_v17 = vld [vmem:[#allocation15 + $0xc0] sm:$0xf]  ;;  %v2564_v18 = vld [vmem:[#allocation15 + $0xc8] sm:$0xf0]  ;;  %v2054_v27 = vor.u32 %v2540_v14, %v2053_v13 }
 0x101   : > { %1449 = vmatpush.bf16.msra.mxu1 %v2186_v54  ;;  %v2245_v19 = vld [vmem:[#allocation15 + $0x180] sm:$0xf]  ;;  %v2354_v20 = vor.u32 %v2615_v11, %v2353_v10  ;;  %v2588_v21 = vld [vmem:[#allocation15 + $0x188] sm:$0xf0]  ;;  %v2139_v25 = vld [vmem:[#allocation15 + $0xb4] sm:$0xf0]  ;;  %v2150_v32 = vor.u32 %v2564_v18, %v2149_v17 }
 0x102   : > { %1463 = vmatpush.bf16.msra.mxu2 %v2282_v55  ;;  %v2341_v22 = vld [vmem:[#allocation15 + $0x240] sm:$0xf]  ;;  %v2612_v23 = vld [vmem:[#allocation15 + $0x248] sm:$0xf0]  ;;  %v2235_v28 = vld [vmem:[#allocation15 + $0x174] sm:$0xf0]  ;;  %v2246_v33 = vor.u32 %v2588_v21, %v2245_v19 }
 0x103   : > { %1477 = vmatpush.bf16.msra.mxu3 %v2378_v59  ;;  %v2560_v24 = vld [vmem:[#allocation15 + $0xac] sm:$0xf]  ;;  %v2331_v31 = vld [vmem:[#allocation15 + $0x234] sm:$0xf0]  ;;  %v2342_v36 = vor.u32 %v2612_v23, %v2341_v22  ;;  %v2557_v40 = vld [vmem:[#allocation15 + $0x94] sm:$0xf] }
 0x104   : > { %1436 = vmatpush.bf16.msra.mxu0 %v2078_v1  ;;  %v2584_v26 = vld [vmem:[#allocation15 + $0x16c] sm:$0xf]  ;;  %v2427_v35 = vld [vmem:[#allocation15 + $0x2f4] sm:$0xf0]  ;;  %v2142_v37 = vor.u32 %v2560_v24, %v2139_v25  ;;  %v2127_v41 = vld [vmem:[#allocation15 + $0x9c] sm:$0xf0] }
 0x105   : > { %1450 = vmatpush.bf16.msra.mxu1 %v2174_v2  ;;  %v2608_v29 = vld [vmem:[#allocation15 + $0x22c] sm:$0xf]  ;;  %v2238_v38 = vor.u32 %v2584_v26, %v2235_v28  ;;  %v2581_v42 = vld [vmem:[#allocation15 + $0x154] sm:$0xf]  ;;  %v2223_v44 = vld [vmem:[#allocation15 + $0x15c] sm:$0xf0]  ;;  %v2130_v50 = vor.u32 %v2557_v40, %v2127_v41 }
 0x106   : > { %1464 = vmatpush.bf16.msra.mxu2 %v2270_v3  ;;  %v2632_v34 = vld [vmem:[#allocation15 + $0x2ec] sm:$0xf]  ;;  %v2334_v39 = vor.u32 %v2608_v29, %v2331_v31  ;;  %v2605_v45 = vld [vmem:[#allocation15 + $0x214] sm:$0xf]  ;;  %v2319_v46 = vld [vmem:[#allocation15 + $0x21c] sm:$0xf0]  ;;  %v2226_v54 = vor.u32 %v2581_v42, %v2223_v44 }
 0x107   : > { %1478 = vmatpush.bf16.msra.mxu3 %v2366_v7  ;;  %v2430_v43 = vor.u32 %v2632_v34, %v2427_v35  ;;  %v2629_v47 = vld [vmem:[#allocation15 + $0x2d4] sm:$0xf]  ;;  %v2415_v48 = vld [vmem:[#allocation15 + $0x2dc] sm:$0xf0]  ;;  %v2554_v49 = vld [vmem:[#allocation15 + $0x7c] sm:$0xf]  ;;  %v2322_v55 = vor.u32 %v2605_v45, %v2319_v46 }
 0x108   : > { %1437 = vmatpush.bf16.msra.mxu0 %v2066_v12  ;;  %v2115_v51 = vld [vmem:[#allocation15 + $0x84] sm:$0xf0]  ;;  %v2578_v52 = vld [vmem:[#allocation15 + $0x13c] sm:$0xf]  ;;  %v675_v58 = vld [vmem:[#allocation3] sm:$0xf]  ;;  %v2418_v59 = vor.u32 %v2629_v47, %v2415_v48 }
 0x109   : > { %1451 = vmatpush.bf16.msra.mxu1 %v2162_v15  ;;  %v2211_v53 = vld [vmem:[#allocation15 + $0x144] sm:$0xf0]  ;;  %v2602_v56 = vld [vmem:[#allocation15 + $0x1fc] sm:$0xf]  ;;  %v3204_v61 = vmul.f32 0.0625, %v675_v58  ;;  %v2118_v1 = vor.u32 %v2554_v49, %v2115_v51 }
 0x10a   : > { %1465 = vmatpush.bf16.msra.mxu2 %v2258_v16  ;;  %v2307_v57 = vld [vmem:[#allocation15 + $0x204] sm:$0xf0]  ;;  %v2626_v60 = vld [vmem:[#allocation15 + $0x2bc] sm:$0xf]  ;;  %v2214_v3 = vor.u32 %v2578_v52, %v2211_v53  ;;  %v2551_v5 = vld [vmem:[#allocation15 + $0x64] sm:$0xf] }
 0x10b   : > { %1479 = vmatpush.bf16.msra.mxu3 %v2354_v20  ;;  %v677_v62 = vld [vmem:[#allocation4] sm:$0xf]  ;;  %v2403_v63 = vld [vmem:[#allocation15 + $0x2c4] sm:$0xf0]  ;;  %v679_v2 = vmul.f32 %v3204_v61, %v3204_v61  ;;  %v2310_v4 = vor.u32 %v2602_v56, %v2307_v57  ;;  %v2103_v6 = vld [vmem:[#allocation15 + $0x6c] sm:$0xf0] }
 0x10c   : > { %1438 = vmatpush.bf16.msra.mxu0 %v2054_v27  ;;  %v678_v0 = vmul.f32 0.0625, %v677_v62  ;;  %v2575_v7 = vld [vmem:[#allocation15 + $0x124] sm:$0xf]  ;;  %v2406_v8 = vor.u32 %v2626_v60, %v2403_v63  ;;  %v2199_v9 = vld [vmem:[#allocation15 + $0x12c] sm:$0xf0]  ;;  %v2106_v14 = vor.u32 %v2551_v5, %v2103_v6 }
 0x10d   : > { %1452 = vmatpush.bf16.msra.mxu1 %v2150_v32  ;;  %v2599_v30 = vld [vmem:[#allocation15 + $0x1e4] sm:$0xf]  ;;  %v2295_v10 = vld [vmem:[#allocation15 + $0x1ec] sm:$0xf0]  ;;  %v2548_v15 = vld [vmem:[#allocation15 + $0x4c] sm:$0xf]  ;;  %v2202_v17 = vor.u32 %v2575_v7, %v2199_v9 }
 0x10e   : > { %1466 = vmatpush.bf16.msra.mxu2 %v2246_v33  ;;  %v680_v11 = vsub.f32 %v678_v0, %v679_v2  ;;  %v2623_v12 = vld [vmem:[#allocation15 + $0x2a4] sm:$0xf]  ;;  %v2391_v13 = vld [vmem:[#allocation15 + $0x2ac] sm:$0xf0]  ;;  %v2298_v18 = vor.u32 %v2599_v30, %v2295_v10  ;;  %v2091_v19 = vld [vmem:[#allocation15 + $0x54] sm:$0xf0] }
 0x10f   : > { %1480 = vmatpush.bf16.msra.mxu3 %v2342_v36  ;;  %v2572_v20 = vld [vmem:[#allocation15 + $0x10c] sm:$0xf]  ;;  %v2187_v21 = vld [vmem:[#allocation15 + $0x114] sm:$0xf0]  ;;  %v2394_v22 = vor.u32 %v2623_v12, %v2391_v13  ;;  %v2094_v28 = vor.u32 %v2548_v15, %v2091_v19  ;;  %v2545_v34 = vld [vmem:[#allocation15 + $0x34] sm:$0xf] }
 0x110   : > { %1487 = vmatpush.bf16.msrb.mxu0 %v2142_v37  ;;  %v681_v16 = vmax.f32 %v680_v11, 0.0  ;;  %v2596_v23 = vld [vmem:[#allocation15 + $0x1cc] sm:$0xf]  ;;  %v2283_v24 = vld [vmem:[#allocation15 + $0x1d4] sm:$0xf0]  ;;  %v2190_v29 = vor.u32 %v2572_v20, %v2187_v21  ;;  %v710_v21 = vld [vmem:[#allocation2 + $0x8] sm:$0xff] }
 0x111   : > { %1501 = vmatpush.bf16.msrb.mxu1 %v2238_v38  ;;  %v2620_v26 = vld [vmem:[#allocation15 + $0x28c] sm:$0xf]  ;;  %v2379_v27 = vld [vmem:[#allocation15 + $0x294] sm:$0xf0]  ;;  %v2286_v31 = vor.u32 %v2596_v23, %v2283_v24  ;;  %v2079_v35 = vld [vmem:[#allocation15 + $0x3c] sm:$0xf0] }
 0x112   : > { %1515 = vmatpush.bf16.msrb.mxu2 %v2334_v39  ;;  %v683_v25 = vadd.f32 1e-05, %v681_v16  ;;  %v2382_v32 = vor.u32 %v2620_v26, %v2379_v27  ;;  %v2569_v36 = vld [vmem:[#allocation15 + $0xf4] sm:$0xf]  ;;  %v2082_v38 = vor.u32 %v2545_v34, %v2079_v35  ;;  %v2175_v39 = vld [vmem:[#allocation15 + $0xfc] sm:$0xf0] }
 0x113   : > { %1529 = vmatpush.bf16.msrb.mxu3 %v2430_v43  ;;  %v2593_v40 = vld [vmem:[#allocation15 + $0x1b4] sm:$0xf]  ;;  %v2271_v41 = vld [vmem:[#allocation15 + $0x1bc] sm:$0xf0]  ;;  %v2178_v42 = vor.u32 %v2569_v36, %v2175_v39  ;;  %v2542_v49 = vld [vmem:[#allocation15 + $0x1c] sm:$0xf] }
 0x114   : > { %1488 = vmatpush.bf16.msrb.mxu0 %v2130_v50  ;;  %2770 = vrsqrt.f32 %v683_v25  ;;  %v2274_v43 = vor.u32 %v2593_v40, %v2271_v41  ;;  %v2617_v44 = vld [vmem:[#allocation15 + $0x274] sm:$0xf]  ;;  %v2367_v45 = vld [vmem:[#allocation15 + $0x27c] sm:$0xf0]  ;;  %vm690_vm6 = vweird.f32 %v683_v25  ;;  %v2067_v50 = vld [vmem:[#allocation15 + $0x24] sm:$0xf0] }
 0x115   : > { %1502 = vmatpush.bf16.msrb.mxu1 %v2226_v54  ;;  %v2370_v47 = vor.u32 %v2617_v44, %v2367_v45  ;;  %v2566_v51 = vld [vmem:[#allocation15 + $0xdc] sm:$0xf]  ;;  %v682_v52 = vld [vmem:[#allocation12] sm:$0xf]  ;;  %v2070_v56 = vor.u32 %v2542_v49, %v2067_v50  ;;  %v2163_v57 = vld [vmem:[#allocation15 + $0xe4] sm:$0xf0] }
 0x116   : > { %1516 = vmatpush.bf16.msrb.mxu2 %v2322_v55  ;;  %v695_v55 = vlaneseq  ;;  %v2590_v58 = vld [vmem:[#allocation15 + $0x19c] sm:$0xf]  ;;  %v2259_v60 = vld [vmem:[#allocation15 + $0x1a4] sm:$0xf0]  ;;  %v2563_v5 = vld [vmem:[#allocation15 + $0xc4] sm:$0xf] }
 0x117   : > { %1530 = vmatpush.bf16.msrb.mxu3 %v2418_v59  ;;  %v2166_v59 = vor.u32 %v2566_v51, %v2163_v57  ;;  %v2614_v62 = vld [vmem:[#allocation15 + $0x25c] sm:$0xf]  ;;  %v2355_v63 = vld [vmem:[#allocation15 + $0x264] sm:$0xf0]  ;;  %v2151_v7 = vld [vmem:[#allocation15 + $0xcc] sm:$0xf0] }
 0x118   : > { %1489 = vmatpush.bf16.msrb.mxu0 %v2118_v1  ;;  %v2262_v1 = vor.u32 %v2590_v58, %v2259_v60  ;;  %v2358_v2 = vor.u32 %v2614_v62, %v2355_v63  ;;  %v2247_v9 = vld [vmem:[#allocation15 + $0x18c] sm:$0xf0]  ;;  %vm3214_vm9 = vcmp.lt.s32.totalorder %v695_v55, 512  ;;  %v2154_v11 = vor.u32 %v2563_v5, %v2151_v7  ;;  %v2611_v13 = vld [vmem:[#allocation15 + $0x244] sm:$0xf]  ;;  %v708_v20 = vld [vmem:[#allocation2] sm:$0xff] }
 0x119   : > { %1503 = vmatpush.bf16.msrb.mxu1 %v2214_v3  ;;  %v2539_v3 = vld [vmem:[#allocation15 + $0x4] sm:$0xf]  ;;  %v709_v23 = vld [vmem:[#allocation2 + $0x18] sm:$0xff]  ;;  %v713_v24 = vunpack.c.l.bf16 %v708_v20  ;;  %v2610_v44 = vld [vmem:[#allocation15 + $0x238] sm:$0xf0] }
 0x11a   : > { %1517 = vmatpush.bf16.msrb.mxu2 %v2310_v4  ;;  %v2771_v33 = vpop.eup %2770  ;;  %v2055_v4 = vld [vmem:[#allocation15 + $0xc] sm:$0xf0]  ;;  %v715_v27 = vunpack.c.l.bf16 %v709_v23 }
 0x11b   : > { %1531 = vmatpush.bf16.msrb.mxu3 %v2406_v8  ;;  %v685_v37 = vmul.f32 %v2771_v33, %v683_v25  ;;  %vm691_vm7 = vweird.f32 %v2771_v33  ;;  %v2058_v6 = vor.u32 %v2539_v3, %v2055_v4  ;;  %v2587_v8 = vld [vmem:[#allocation15 + $0x184] sm:$0xf]  ;;  %v717_v25 = vunpack.c.l.bf16 %v710_v21  ;;  %v2241_v5 = vld [vmem:[#allocation15 + $0x170] sm:$0xf] }
 0x11c   : > { %1490 = vmatpush.bf16.msrb.mxu0 %v2106_v14  ;;  %vm3208_vm8 = vmor %vm690_vm6, %vm691_vm7  ;;  %v2250_v12 = vor.u32 %v2587_v8, %v2247_v9  ;;  %v2343_v14 = vld [vmem:[#allocation15 + $0x24c] sm:$0xf0] }
 0x11d   : > { %1504 = vmatpush.bf16.msrb.mxu1 %v2202_v17  ;;  %v686_v46 = vmul.f32 %v2771_v33, %v685_v37  ;;  %v2346_v16 = vor.u32 %v2611_v13, %v2343_v14  ;;  %v700_v17 = vld [vmem:[#allocation13] sm:$0xf]  ;;  %v3223_v37 = vld [vmem:[#allocation15 + $0xb0] sm:$0xf]  ;;  %v2133_v14 = vld [vmem:[#allocation15 + $0x98] sm:$0xf] }
 0x11e   : > { %1518 = vmatpush.bf16.msrb.mxu2 %v2298_v18  ;;  %v2433_v9 = vld [vmem:[#allocation15 + $0x2f0] sm:$0xf] }
 0x11f   : > { %1532 = vmatpush.bf16.msrb.mxu3 %v2394_v22  ;;  %v687_v48 = vmul.f32 0.5, %v686_v46  ;;  %v707_v22 = vld [vmem:[#allocation2 + $0x10] sm:$0xff] }
 0x120   : > { %1491 = vmatpush.bf16.msrb.mxu0 %v2094_v28  ;;  %v711_v26 = vunpack.c.l.bf16 %v707_v22 }
 0x121   : > { %1505 = vmatpush.bf16.msrb.mxu1 %v2190_v29  ;;  %v688_v53 = vsub.f32 1.5, %v687_v48  ;;  %v714_v29 = vunpack.c.h.bf16 %v708_v20 }
 0x122   : > { %1519 = vmatpush.bf16.msrb.mxu2 %v2286_v31  ;;  %v718_v31 = vunpack.c.h.bf16 %v710_v21 }
 0x123   : > { %1533 = vmatpush.bf16.msrb.mxu3 %v2382_v32  ;;  %v689_v0 = vmul.f32 %v2771_v33, %v688_v53  ;;  %v712_v32 = vunpack.c.h.bf16 %v707_v22  ;;  %v2607_v22 = vld [vmem:[#allocation15 + $0x220] sm:$0xf0] }
 0x124   : > { %1492 = vmatpush.bf16.msrb.mxu0 %v2082_v38 }
 0x125   : > { %1506 = vmatpush.bf16.msrb.mxu1 %v2178_v42  ;;  %v693_v30 = vsel %vm3208_vm8, %v2771_v33, %v689_v0  ;;  %v3225_v42 = vld [vmem:[#allocation15 + $0xb8] sm:$0xf0] }
 0x126   : > { %1520 = vmatpush.bf16.msrb.mxu2 %v2274_v43  ;;  %v694_v15 = vmul.f32 %v693_v30, %v682_v52  ;;  %v2337_v43 = vld [vmem:[#allocation15 + $0x230] sm:$0xf]  ;;  %v2146_v54 = vor.u32 %v3225_v42, %v3223_v37  ;;  %v2634_v30 = vld [vmem:[#allocation15 + $0x2f8] sm:$0xf0]  ;;  %v2556_v37 = vld [vmem:[#allocation15 + $0x88] sm:$0xf0] }
 0x127   : > { %1534 = vmatpush.bf16.msrb.mxu3 %v2370_v47  ;;  %v2338_v55 = vor.u32 %v2610_v44, %v2337_v43  ;;  %v2217_v43 = vld [vmem:[#allocation15 + $0x140] sm:$0xf] }
 0x128   : > { %1493 = vmatpush.bf16.msrb.mxu0 %v2070_v56  ;;  %699 = vst.msk [vmem:[#allocation5] sm:$0xf] %vm3214_vm9, %v694_v15  ;;  %v701_v18 = vmul.f32 %v694_v15, %v3204_v61  ;;  %v716_v61 = vunpack.c.h.bf16 %v709_v23  ;;  %v2559_v15 = vld [vmem:[#allocation15 + $0xa0] sm:$0xf0]  ;;  %v2409_v44 = vld [vmem:[#allocation15 + $0x2c0] sm:$0xf] }
 0x129   : > { %1507 = vmatpush.bf16.msrb.mxu1 %v2166_v59 }
 0x12a   : > { %1521 = vmatpush.bf16.msrb.mxu2 %v2262_v1  ;;  %v702_v19 = vsub.f32 %v700_v17, %v701_v18  ;;  %v2325_v18 = vld [vmem:[#allocation15 + $0x218] sm:$0xf] }
 0x12b   : > { %1535 = vmatpush.bf16.msrb.mxu3 %v2358_v2 }
 0x12c   : > { %1494 = vmatpush.bf16.msrb.mxu0 %v2058_v6  ;;  %703 = vst.msk [vmem:[#allocation6] sm:$0xf] %vm3214_vm9, %v702_v19  ;;  %v2586_v6 = vld [vmem:[#allocation15 + $0x178] sm:$0xf0] }
 0x12d   : > { %1508 = vmatpush.bf16.msrb.mxu1 %v2154_v11 }
 0x12e   : > { %1522 = vmatpush.bf16.msrb.mxu2 %v2250_v12 }
 0x12f   : > { %1536 = vmatpush.bf16.msrb.mxu3 %v2346_v16  ;;  %v719_v28 = vld [vmem:[#allocation5] sm:$0xf] }
 0x130   : > { %v723_v33 = vperm.slane %v719_v28, 2  ;;  %v721_v34 = vperm.slane %v719_v28, 0  ;;  %v724_v35 = vperm.slane %v719_v28, 3  ;;  %v722_v36 = vperm.slane %v719_v28, 1 }
 0x132   : > { %v731_v38 = vmul.f32 %v723_v33, %v713_v24  ;;  %v735_v39 = vmul.f32 %v723_v33, %v717_v25  ;;  %v729_v40 = vmul.f32 %v721_v34, %v711_v26  ;;  %v733_v41 = vmul.f32 %v721_v34, %v715_v27  ;;  %v2583_v34 = vld [vmem:[#allocation15 + $0x160] sm:$0xf0] }
 0x133   : > { %v737_v45 = vld [vmem:[#allocation6] sm:$0xf]  ;;  %v732_v46 = vmul.f32 %v724_v35, %v714_v29  ;;  %v736_v47 = vmul.f32 %v724_v35, %v718_v31  ;;  %v730_v48 = vmul.f32 %v722_v36, %v712_v32  ;;  %v734_v49 = vmul.f32 %v722_v36, %v716_v61  ;;  %v2229_v31 = vld [vmem:[#allocation15 + $0x158] sm:$0xf]  ;;  %v2121_v36 = vld [vmem:[#allocation15 + $0x80] sm:$0xf] }
 0x134   : > { %v741_v50 = vperm.slane %v737_v45, 2  ;;  %v739_v51 = vperm.slane %v737_v45, 0  ;;  %v742_v52 = vperm.slane %v737_v45, 3  ;;  %v740_v53 = vperm.slane %v737_v45, 1  ;;  %v2421_v32 = vld [vmem:[#allocation15 + $0x2d8] sm:$0xf] }
 0x135   : > { %v2242_v24 = vor.u32 %v2586_v6, %v2241_v5  ;;  %v2434_v25 = vor.u32 %v2634_v30, %v2433_v9  ;;  %v2134_v29 = vor.u32 %v2559_v15, %v2133_v14  ;;  %v2631_v61 = vld [vmem:[#allocation15 + $0x2e0] sm:$0xf0]  ;;  %v2326_v35 = vor.u32 %v2607_v22, %v2325_v18  ;;  %v2628_v45 = vld [vmem:[#allocation15 + $0x2c8] sm:$0xf0]  ;;  %v2385_v5 = vld [vmem:[#allocation15 + $0x290] sm:$0xf] }
 0x136   : > { %v749_v56 = vadd.f32 %v741_v50, %v731_v38  ;;  %v753_v57 = vadd.f32 %v741_v50, %v735_v39  ;;  %v747_v58 = vadd.f32 %v739_v51, %v729_v40  ;;  %v751_v59 = vadd.f32 %v739_v51, %v733_v41  ;;  %v2313_v38 = vld [vmem:[#allocation15 + $0x200] sm:$0xf]  ;;  %v2604_v39 = vld [vmem:[#allocation15 + $0x208] sm:$0xf0]  ;;  %v2301_v50 = vld [vmem:[#allocation15 + $0x1e8] sm:$0xf] }
 0x137   : > { %v750_v60 = vadd.f32 %v742_v52, %v732_v46  ;;  %v754_v62 = vadd.f32 %v742_v52, %v736_v47  ;;  %v748_v63 = vadd.f32 %v740_v53, %v730_v48  ;;  %v752_v0 = vadd.f32 %v740_v53, %v734_v49  ;;  %v2580_v46 = vld [vmem:[#allocation15 + $0x148] sm:$0xf0]  ;;  %v2109_v48 = vld [vmem:[#allocation15 + $0x68] sm:$0xf]  ;;  %v2553_v49 = vld [vmem:[#allocation15 + $0x70] sm:$0xf0] }
 0x138   : > { %vm757_vm10 = vcmp.ge.f32.partialorder %v749_v56, 0.0  ;;  %vm761_vm11 = vcmp.ge.f32.partialorder %v753_v57, 0.0  ;;  %v765_v1 = vmul.f32 0.01, %v749_v56  ;;  %v769_v2 = vmul.f32 0.01, %v753_v57 }
 0x139   : > { %vm755_vm12 = vcmp.ge.f32.partialorder %v747_v58, 0.0  ;;  %vm759_vm13 = vcmp.ge.f32.partialorder %v751_v59, 0.0  ;;  %v763_v3 = vmul.f32 0.01, %v747_v58  ;;  %v767_v4 = vmul.f32 0.01, %v751_v59 }
 0x13a   : > { %v773_v7 = vsel %vm757_vm10, %v749_v56, %v765_v1  ;;  %v777_v8 = vsel %vm761_vm11, %v753_v57, %v769_v2  ;;  %vm758_vm14 = vcmp.ge.f32.partialorder %v750_v60, 0.0  ;;  %vm762_vm15 = vcmp.ge.f32.partialorder %v754_v62, 0.0  ;;  %v2601_v51 = vld [vmem:[#allocation15 + $0x1f0] sm:$0xf0]  ;;  %v2397_v56 = vld [vmem:[#allocation15 + $0x2a8] sm:$0xf] }
 0x13b   : > { %v3229_v10 = vpack.c.bf16 %v777_v8, %v773_v7  ;;  %v771_v11 = vsel %vm755_vm12, %v747_v58, %v763_v3  ;;  %v775_v12 = vsel %vm759_vm13, %v751_v59, %v767_v4  ;;  %v766_v13 = vmul.f32 0.01, %v750_v60  ;;  %v2625_v57 = vld [vmem:[#allocation15 + $0x2b0] sm:$0xf0]  ;;  %v2193_v4 = vld [vmem:[#allocation15 + $0x110] sm:$0xf] }
 0x13c   : > { %v3231_v16 = vpack.c.bf16 %v775_v12, %v771_v11  ;;  %v770_v17 = vmul.f32 0.01, %v754_v62  ;;  %vm756_vm0 = vcmp.ge.f32.partialorder %v748_v63, 0.0  ;;  %vm760_vm1 = vcmp.ge.f32.partialorder %v752_v0, 0.0  ;;  %v2577_v58 = vld [vmem:[#allocation15 + $0x130] sm:$0xf0] }
 0x13d   : > { %1467 = vmatmul.bf16.vlgmr.msra.gmra.mxu2 %v3229_v10  ;;  %v774_v19 = vsel %vm758_vm14, %v750_v60, %v766_v13  ;;  %v764_v20 = vmul.f32 0.01, %v748_v63  ;;  %v768_v21 = vmul.f32 0.01, %v752_v0  ;;  %v2422_v40 = vor.u32 %v2631_v61, %v2421_v32  ;;  %v2097_v60 = vld [vmem:[#allocation15 + $0x50] sm:$0xf] }
 0x13e   : > { %1439 = vmatmul.bf16.vlgmr.msra.gmra.mxu0 %v3231_v16  ;;  %v778_v23 = vsel %vm762_vm15, %v754_v62, %v770_v17  ;;  %1571 = vmatpush.bf16.msra.mxu2 %v2338_v55  ;;  %v2230_v41 = vor.u32 %v2583_v34, %v2229_v31  ;;  %v2122_v42 = vor.u32 %v2556_v37, %v2121_v36  ;;  %v2205_v55 = vld [vmem:[#allocation15 + $0x128] sm:$0xf]  ;;  %v2550_v62 = vld [vmem:[#allocation15 + $0x58] sm:$0xf0]  ;;  %v2085_v9 = vld [vmem:[#allocation15 + $0x38] sm:$0xf] }
 0x13f   : > { %v3237_v26 = vpack.c.bf16 %v778_v23, %v774_v19  ;;  %v772_v27 = vsel %vm756_vm0, %v748_v63, %v764_v20  ;;  %v776_v28 = vsel %vm760_vm1, %v752_v0, %v768_v21  ;;  %1543 = vmatpush.bf16.msra.mxu0 %v2146_v54  ;;  %v2314_v47 = vor.u32 %v2604_v39, %v2313_v38  ;;  %v2289_v63 = vld [vmem:[#allocation15 + $0x1d0] sm:$0xf]  ;;  %v2598_v0 = vld [vmem:[#allocation15 + $0x1d8] sm:$0xf0]  ;;  %v2547_v30 = vld [vmem:[#allocation15 + $0x40] sm:$0xf0] }
 0x140   : > { %v3239_v33 = vpack.c.bf16 %v776_v28, %v772_v27  ;;  %v2410_v52 = vor.u32 %v2628_v45, %v2409_v44  ;;  %v2218_v53 = vor.u32 %v2580_v46, %v2217_v43  ;;  %v2110_v54 = vor.u32 %v2553_v49, %v2109_v48  ;;  %v2622_v6 = vld [vmem:[#allocation15 + $0x298] sm:$0xf0]  ;;  %v2277_v11 = vld [vmem:[#allocation15 + $0x1b8] sm:$0xf]  ;;  %v2595_v12 = vld [vmem:[#allocation15 + $0x1c0] sm:$0xf0] }
 0x141   : > { %1481 = vmatmul.bf16.vlgmr.msra.gmra.mxu3 %v3237_v26  ;;  %v2302_v59 = vor.u32 %v2601_v51, %v2301_v50  ;;  %v2398_v1 = vor.u32 %v2625_v57, %v2397_v56  ;;  %v2206_v2 = vor.u32 %v2577_v58, %v2205_v55  ;;  %v2098_v3 = vor.u32 %v2550_v62, %v2097_v60  ;;  %v2574_v7 = vld [vmem:[#allocation15 + $0x118] sm:$0xf0]  ;;  %v2181_v17 = vld [vmem:[#allocation15 + $0xf8] sm:$0xf]  ;;  %v2619_v19 = vld [vmem:[#allocation15 + $0x280] sm:$0xf0] }
 0x142   : > { %1453 = vmatmul.bf16.vlgmr.msra.gmra.mxu1 %v3239_v33  ;;  %1585 = vmatpush.bf16.msra.mxu3 %v2434_v25  ;;  %v2290_v8 = vor.u32 %v2598_v0, %v2289_v63  ;;  %v2386_v13 = vor.u32 %v2622_v6, %v2385_v5  ;;  %v2194_v14 = vor.u32 %v2574_v7, %v2193_v4  ;;  %v2373_v18 = vld [vmem:[#allocation15 + $0x278] sm:$0xf]  ;;  %v2571_v20 = vld [vmem:[#allocation15 + $0x100] sm:$0xf0]  ;;  %v2073_v22 = vld [vmem:[#allocation15 + $0x20] sm:$0xf] }
 0x143   : > { %1557 = vmatpush.bf16.msra.mxu1 %v2242_v24  ;;  %1544 = vmatpush.bf16.msra.mxu0 %v2134_v29  ;;  %v2086_v15 = vor.u32 %v2547_v30, %v2085_v9  ;;  %v2278_v21 = vor.u32 %v2595_v12, %v2277_v11  ;;  %v2544_v23 = vld [vmem:[#allocation15 + $0x28] sm:$0xf0]  ;;  %v2265_v24 = vld [vmem:[#allocation15 + $0x1a0] sm:$0xf]  ;;  %v2374_v27 = vor.u32 %v2619_v19, %v2373_v18  ;;  %v2061_v36 = vld [vmem:[#allocation15 + $0x8] sm:$0xf] }
 0x144   : > { %1572 = vmatpush.bf16.msra.mxu2 %v2326_v35  ;;  %v2592_v25 = vld [vmem:[#allocation15 + $0x1a8] sm:$0xf0]  ;;  %v2182_v28 = vor.u32 %v2571_v20, %v2181_v17  ;;  %v2074_v29 = vor.u32 %v2544_v23, %v2073_v22  ;;  %v2169_v31 = vld [vmem:[#allocation15 + $0xe0] sm:$0xf]  ;;  %v2541_v37 = vld [vmem:[#allocation15 + $0x10] sm:$0xf0] }
 0x145   : > { %v2361_v32 = vld [vmem:[#allocation15 + $0x260] sm:$0xf]  ;;  %v2616_v61 = vld [vmem:[#allocation15 + $0x268] sm:$0xf0]  ;;  %v2266_v35 = vor.u32 %v2592_v25, %v2265_v24  ;;  %v2253_v38 = vld [vmem:[#allocation15 + $0x188] sm:$0xf] }
 0x146   : > { %1586 = vmatpush.bf16.msra.mxu3 %v2422_v40  ;;  %v2568_v34 = vld [vmem:[#allocation15 + $0xe8] sm:$0xf0]  ;;  %v2589_v39 = vld [vmem:[#allocation15 + $0x190] sm:$0xf0]  ;;  %v2362_v40 = vor.u32 %v2616_v61, %v2361_v32  ;;  %v2349_v43 = vld [vmem:[#allocation15 + $0x248] sm:$0xf] }
 0x147   : > { %1558 = vmatpush.bf16.msra.mxu1 %v2230_v41  ;;  %1545 = vmatpush.bf16.msra.mxu0 %v2122_v42  ;;  %v2170_v41 = vor.u32 %v2568_v34, %v2169_v31  ;;  %v2062_v42 = vor.u32 %v2541_v37, %v2061_v36  ;;  %v2613_v44 = vld [vmem:[#allocation15 + $0x250] sm:$0xf0]  ;;  %v2157_v45 = vld [vmem:[#allocation15 + $0xc8] sm:$0xf]  ;;  %v2642_v48 = vld [vmem:[#allocation16 + $0x38] sm:$0xff] }
 0x148   : > { %1573 = vmatpush.bf16.msra.mxu2 %v2314_v47  ;;  %v2565_v46 = vld [vmem:[#allocation15 + $0xd0] sm:$0xf0]  ;;  %v2254_v47 = vor.u32 %v2589_v39, %v2253_v38  ;;  %v2350_v49 = vor.u32 %v2613_v44, %v2349_v43  ;;  %v2650_v55 = vld [vmem:[#allocation16 + $0x78] sm:$0xff]  ;;  %v2648_v58 = vld [vmem:[#allocation16 + $0x68] sm:$0xff] }
 0x149   : > { %v2158_v50 = vor.u32 %v2565_v46, %v2157_v45  ;;  %v2641_v51 = vld [vmem:[#allocation16 + $0x30] sm:$0xff]  ;;  %v2644_v0 = vld [vmem:[#allocation16 + $0x48] sm:$0xff]  ;;  %v2643_v4 = vld [vmem:[#allocation16 + $0x40] sm:$0xff] }
 0x14a   : > { %1587 = vmatpush.bf16.msra.mxu3 %v2410_v52  ;;  %v2640_v52 = vld [vmem:[#allocation16 + $0x28] sm:$0xff]  ;;  %v2637_v56 = vld [vmem:[#allocation16 + $0x10] sm:$0xff]  ;;  %v2654_v20 = vld [vmem:[#allocation16 + $0x98] sm:$0xff] }
 0x14b   : > { %1559 = vmatpush.bf16.msra.mxu1 %v2218_v53  ;;  %1546 = vmatpush.bf16.msra.mxu0 %v2110_v54  ;;  %v2639_v53 = vld [vmem:[#allocation16 + $0x20] sm:$0xff]  ;;  %v2638_v54 = vld [vmem:[#allocation16 + $0x18] sm:$0xff]  ;;  %v2649_v57 = vld [vmem:[#allocation16 + $0x70] sm:$0xff] }
 0x14c   : > { %1574 = vmatpush.bf16.msra.mxu2 %v2302_v59  ;;  %v2647_v59 = vld [vmem:[#allocation16 + $0x60] sm:$0xff]  ;;  %v2645_v60 = vld [vmem:[#allocation16 + $0x50] sm:$0xff]  ;;  %v2656_v9 = vld [vmem:[#allocation16 + $0xa8] sm:$0xff] }
 0x14d   : > { %1523 = vmatmul.bf16.vlgmr.msrb.gmra.mxu2 %v3229_v10  ;;  %v2657_v5 = vld [vmem:[#allocation16 + $0xb0] sm:$0xff]  ;;  %v2652_v37 = vld [vmem:[#allocation16 + $0x88] sm:$0xff] }
 0x14e   : > { %1495 = vmatmul.bf16.vlgmr.msrb.gmra.mxu0 %v3231_v16  ;;  %1588 = vmatpush.bf16.msra.mxu3 %v2398_v1  ;;  %v2658_v1 = vld [vmem:[#allocation16 + $0xb8] sm:$0xff] }
 0x14f   : > { %1560 = vmatpush.bf16.msra.mxu1 %v2206_v2  ;;  %1547 = vmatpush.bf16.msra.mxu0 %v2098_v3 }
 0x150   : > { %1575 = vmatpush.bf16.msra.mxu2 %v2290_v8 }
 0x151   : > { %1537 = vmatmul.bf16.vlgmr.msrb.gmra.mxu3 %v3237_v26 }
 0x152   : > { %1509 = vmatmul.bf16.vlgmr.msrb.gmra.mxu1 %v3239_v33  ;;  %1589 = vmatpush.bf16.msra.mxu3 %v2386_v13  ;;  %v2655_v13 = vld [vmem:[#allocation16 + $0xa0] sm:$0xff] }
 0x153   : > { %1561 = vmatpush.bf16.msra.mxu1 %v2194_v14  ;;  %1548 = vmatpush.bf16.msra.mxu0 %v2086_v15 }
 0x154   : > { %1576 = vmatpush.bf16.msra.mxu2 %v2278_v21 }
 0x156   : > { %1590 = vmatpush.bf16.msra.mxu3 %v2374_v27 }
 0x157   : > { %1562 = vmatpush.bf16.msra.mxu1 %v2182_v28  ;;  %1549 = vmatpush.bf16.msra.mxu0 %v2074_v29  ;;  %v2653_v28 = vld [vmem:[#allocation16 + $0x90] sm:$0xff] }
 0x158   : > { %1577 = vmatpush.bf16.msra.mxu2 %v2266_v35 }
 0x15a   : > { %1591 = vmatpush.bf16.msra.mxu3 %v2362_v40 }
 0x15b   : > { %1563 = vmatpush.bf16.msra.mxu1 %v2170_v41  ;;  %1550 = vmatpush.bf16.msra.mxu0 %v2062_v42  ;;  %v2651_v42 = vld [vmem:[#allocation16 + $0x80] sm:$0xff] }
 0x15c   : > { %1578 = vmatpush.bf16.msra.mxu2 %v2254_v47 }
 0x15e   : > { %1592 = vmatpush.bf16.msra.mxu3 %v2350_v49  ;;  %1551 = vmatmul.bf16.vlgmr.msra.gmra.mxu0 %v3231_v16  ;;  %v2636_v16 = vld [vmem:[#allocation16 + $0x8] sm:$0xff] }
 0x15f   : > { %1816 = vmatpush.bf16.msrb.mxu0 %v2642_v48  ;;  %1564 = vmatpush.bf16.msra.mxu1 %v2158_v50 }
 0x160   : > { %1579 = vmatmul.bf16.vlgmr.msra.gmra.mxu2 %v3229_v10  ;;  %v2635_v10 = vld [vmem:[#allocation16] sm:$0xff] }
 0x161   : > { %1593 = vmatmul.bf16.vlgmr.msra.gmra.mxu3 %v3237_v26  ;;  %v2646_v26 = vld [vmem:[#allocation16 + $0x58] sm:$0xff]  ;;  %1844 = vmatpush.bf16.msrb.mxu2 %v2658_v1 }
 0x162   : > { %1565 = vmatmul.bf16.vlgmr.msra.gmra.mxu1 %v3239_v33  ;;  %v3254_v33 = vld [vmem:[%s3285_s5] sm:$0x7] }
 0x163   : > { %1817 = vmatpush.bf16.msrb.mxu0 %v2641_v51  ;;  %1830 = vmatpush.bf16.msrb.mxu1 %v2650_v55  ;;  %v913_v62 = vperm.slane %v3254_v33, 0  ;;  %v914_v19 = vperm.slane %v3254_v33, 1  ;;  %v915_v47 = vperm.slane %v3254_v33, 2 }
 0x165   : > { %1845 = vmatpush.bf16.msrb.mxu2 %v2657_v5 }
 0x167   : > { %1818 = vmatpush.bf16.msrb.mxu0 %v2640_v52  ;;  %1831 = vmatpush.bf16.msrb.mxu1 %v2649_v57 }
 0x169   : > { %1846 = vmatpush.bf16.msrb.mxu2 %v2656_v9 }
 0x16b   : > { %1819 = vmatpush.bf16.msrb.mxu0 %v2639_v53  ;;  %1832 = vmatpush.bf16.msrb.mxu1 %v2648_v58 }
 0x16d   : > { %1847 = vmatpush.bf16.msrb.mxu2 %v2655_v13 }
 0x16f   : > { %1820 = vmatpush.bf16.msrb.mxu0 %v2638_v54  ;;  %1833 = vmatpush.bf16.msrb.mxu1 %v2647_v59 }
 0x171   : > { %1848 = vmatpush.bf16.msrb.mxu2 %v2654_v20 }
 0x173   : > { %1821 = vmatpush.bf16.msrb.mxu0 %v2637_v56  ;;  %1834 = vmatpush.bf16.msrb.mxu1 %v2646_v26 }
 0x175   : > { %1849 = vmatpush.bf16.msrb.mxu2 %v2653_v28 }
 0x177   : > { %1822 = vmatpush.bf16.msrb.mxu0 %v2636_v16  ;;  %1835 = vmatpush.bf16.msrb.mxu1 %v2645_v60 }
 0x179   : > { %1850 = vmatpush.bf16.msrb.mxu2 %v2652_v37 }
 0x17b   : > { %1823 = vmatpush.bf16.msrb.mxu0 %v2635_v10  ;;  %1836 = vmatpush.bf16.msrb.mxu1 %v2644_v0 }
 0x17d   : > { %1851 = vmatpush.bf16.msrb.mxu2 %v2651_v42 }
 0x17f   : > { %1837 = vmatpush.bf16.msrb.mxu1 %v2643_v4 }
 0x1bb   : > { %v1440_v63 = vpop.f32.mrf.mxu0 }
 0x1bc   : > { %v1441_v2 = vadd.f32 %v1440_v63, %v913_v62 }
 0x1bf   : > { %v1454_v3 = vpop.f32.mrf.mxu1 }
 0x1c0   : > { %v1468_v6 = vpop.f32.mrf.mxu2  ;;  %v1455_v7 = vadd.f32 %v1454_v3, %v1441_v2 }
 0x1c2   : > { %v1469_v12 = vadd.f32 %v1468_v6, %v1455_v7 }
 0x1c3   : > { %v1442_v8 = vpop.f32.mrf.mxu0 }
 0x1c4   : > { %v1482_v30 = vpop.f32.mrf.mxu3  ;;  %v1443_v11 = vadd.f32 %v1442_v8, %v913_v62 }
 0x1c5   : > { %v1483_v18 = vadd.f32 %v1482_v30, %v1469_v12 }
 0x1c7   : > { %v1456_v14 = vpop.f32.mrf.mxu1  ;;  %v1605_v24 = vmul.f32 0.01, %v1483_v18  ;;  %vm1599_vm2 = vcmp.ge.f32.partialorder %v1483_v18, 0.0 }
 0x1c8   : > { %v1457_v15 = vadd.f32 %v1456_v14, %v1443_v11  ;;  %v1470_v17 = vpop.f32.mrf.mxu2  ;;  %v2769_v11 = vld [vmem:[%s3287_s7] ss:$0 sm:$0xff] }
 0x1c9   : > { %v1611_v61 = vsel %vm1599_vm2, %v1483_v18, %v1605_v24 }
 0x1ca   : > { %v1471_v21 = vadd.f32 %v1470_v17, %v1457_v15 }
 0x1cb   : > { %v1496_v22 = vpop.f32.mrf.mxu0 }
 0x1cc   : > { %v1484_v23 = vpop.f32.mrf.mxu3  ;;  %v1497_v27 = vadd.f32 %v1496_v22, %v914_v19 }
 0x1cd   : > { %v1485_v25 = vadd.f32 %v1484_v23, %v1471_v21 }
 0x1cf   : > { %vm1602_vm3 = vcmp.ge.f32.partialorder %v1485_v25, 0.0  ;;  %v1608_v29 = vmul.f32 0.01, %v1485_v25  ;;  %v1510_v31 = vpop.f32.mrf.mxu1 }
 0x1d0   : > { %v1524_v32 = vpop.f32.mrf.mxu2  ;;  %v1511_v35 = vadd.f32 %v1510_v31, %v1497_v27 }
 0x1d1   : > { %v1614_v34 = vsel %vm1602_vm3, %v1485_v25, %v1608_v29 }
 0x1d2   : > { %v1617_v36 = vpack.c.bf16 %v1614_v34, %v1611_v61  ;;  %v1525_v41 = vadd.f32 %v1524_v32, %v1511_v35 }
 0x1d3   : > { %v1498_v38 = vpop.f32.mrf.mxu0 }
 0x1d4   : > { %v1538_v39 = vpop.f32.mrf.mxu3  ;;  %1824 = vmatmul.bf16.vlgmr.msrb.gmra.mxu0 %v1617_v36  ;;  %v1499_v40 = vadd.f32 %v1498_v38, %v914_v19 }
 0x1d5   : > { %v1539_v46 = vadd.f32 %v1538_v39, %v1525_v41 }
 0x1d7   : > { %v1512_v43 = vpop.f32.mrf.mxu1  ;;  %v1606_v51 = vmul.f32 0.01, %v1539_v46  ;;  %vm1600_vm4 = vcmp.ge.f32.partialorder %v1539_v46, 0.0 }
 0x1d8   : > { %v1513_v44 = vadd.f32 %v1512_v43, %v1499_v40  ;;  %v1526_v45 = vpop.f32.mrf.mxu2 }
 0x1d9   : > { %v1612_v56 = vsel %vm1600_vm4, %v1539_v46, %v1606_v51 }
 0x1da   : > { %v1527_v48 = vadd.f32 %v1526_v45, %v1513_v44 }
 0x1db   : > { %v1552_v49 = vpop.f32.mrf.mxu0 }
 0x1dc   : > { %v1540_v50 = vpop.f32.mrf.mxu3  ;;  %v1553_v53 = vadd.f32 %v1552_v49, %v915_v47 }
 0x1dd   : > { %v1541_v52 = vadd.f32 %v1540_v50, %v1527_v48 }
 0x1df   : > { %vm1603_vm5 = vcmp.ge.f32.partialorder %v1541_v52, 0.0  ;;  %v1609_v54 = vmul.f32 0.01, %v1541_v52  ;;  %v1566_v55 = vpop.f32.mrf.mxu1 }
 0x1e0   : > { %v1567_v16 = vadd.f32 %v1566_v55, %v1553_v53 }
 0x1e1   : > { %v1615_v57 = vsel %vm1603_vm5, %v1541_v52, %v1609_v54 }
 0x1e2   : > { %v1618_v58 = vpack.c.bf16 %v1615_v57, %v1612_v56 }
 0x1e3   : > { %v1580_v10 = vpop.f32.mrf.mxu2  ;;  %v1554_v59 = vpop.f32.mrf.mxu0 }
 0x1e4   : > { %1838 = vmatmul.bf16.vlgmr.msrb.gmra.mxu1 %v1618_v58  ;;  %v1594_v26 = vpop.f32.mrf.mxu3  ;;  %v1581_v33 = vadd.f32 %v1580_v10, %v1567_v16  ;;  %v1555_v60 = vadd.f32 %v1554_v59, %v915_v47 }
 0x1e6   : > { %v1595_v63 = vadd.f32 %v1594_v26, %v1581_v33 }
 0x1e7   : > { %v1568_v62 = vpop.f32.mrf.mxu1 }
 0x1e8   : > { %v1569_v0 = vadd.f32 %v1568_v62, %v1555_v60  ;;  %v1607_v4 = vmul.f32 0.01, %v1595_v63  ;;  %vm1601_vm6 = vcmp.ge.f32.partialorder %v1595_v63, 0.0 }
 0x1ea   : > { %v1613_v7 = vsel %vm1601_vm6, %v1595_v63, %v1607_v4 }
 0x1eb   : > { %v1582_v1 = vpop.f32.mrf.mxu2 }
 0x1ec   : > { %v1583_v2 = vadd.f32 %v1582_v1, %v1569_v0  ;;  %v1596_v3 = vpop.f32.mrf.mxu3 }
 0x1ee   : > { %v1597_v5 = vadd.f32 %v1596_v3, %v1583_v2 }
 0x1f0   : > { %vm1604_vm7 = vcmp.ge.f32.partialorder %v1597_v5, 0.0  ;;  %v1610_v6 = vmul.f32 0.01, %v1597_v5 }
 0x1f2   : > { %v1616_v8 = vsel %vm1604_vm7, %v1597_v5, %v1610_v6 }
 0x1f3   : > { %v1619_v9 = vpack.c.bf16 %v1616_v8, %v1613_v7 }
 0x1f5   : > { %1852 = vmatmul.bf16.vlgmr.msrb.gmra.mxu2 %v1619_v9 }
 0x251   : > { %v1825_v30 = vpop.f32.mrf.mxu0 }
 0x252   : > { %v1826_v13 = vadd.f32 %v2769_v11, %v1825_v30 }
 0x259   : > { %v1827_v18 = vpop.f32.mrf.mxu0 }
 0x25a   : > { %v1828_v20 = vadd.f32 %v2769_v11, %v1827_v18 }
 0x261   : > { %v1839_v12 = vpop.f32.mrf.mxu1 }
 0x262   : > { %v1840_v14 = vadd.f32 %v1839_v12, %v1826_v13 }
 0x269   : > { %v1841_v19 = vpop.f32.mrf.mxu1 }
 0x26a   : > { %v1842_v21 = vadd.f32 %v1841_v19, %v1828_v20 }
 0x278   : > { %v1853_v15 = vpop.f32.mrf.mxu2 }
 0x279   : > { %v1854_v17 = vadd.f32 %v1853_v15, %v1840_v14 }
 0x27b   : > { %2772 = vtanh.f32 %v1854_v17 }
 0x280   : > { %v1855_v22 = vpop.f32.mrf.mxu2 }
 0x281   : > { %v2773_v23 = vpop.eup %2772  ;;  %v1856_v24 = vadd.f32 %v1855_v22, %v1842_v21 }
 0x282   : > { %1860 = vst [vmem:[#allocation18] sm:$0xff] %v2773_v23 }
 0x283   : > { %2774 = vtanh.f32 %v1856_v24 }
 0x289   : > { %v2775_v25 = vpop.eup %2774 }
 0x28a   : > { %1861 = vst [vmem:[#allocation18 + $0x8] sm:$0xff] %v2775_v25 }
 0x28b PF: > { %s3299_s23 = sadd.s32 4294967295, %s3026_s29   ;;  %s1878_s25 = sshll.u32 %s3288_s8, 4  ;;  %s1879_s25 = int_to_ptr.hbm [resolvable:$true] %s1878_s25 }
 0x28c   : > { %p2724_p13 = scmp.eq.s32.totalorder %s3299_s23, 1  ;;  %s3043_s26 = smov [#allocation18]  }
 0x28d   : > { %s1876_s9 = sshll.u32 %s3043_s26, 4  ;;  %s3044_s13 = smov 128   ;;  %s1877_s9 = int_to_ptr.vmem [resolvable:$true] %s1876_s9 }
 0x28e   : > { %s3045_s16 = smov 8  }
 0x28f   : > { %2684 = dma.vmem_to_hbm [thread:$0]  (%p2724_p13), %s1877_s9, 256, %s1879_s25, [#allocation9], %s3044_s13, %s3044_s13, %s3045_s16  }
 0x290 PF: > { %s3300_s30 = sadd.s32 4294967294, %s3026_s29  }
 0x291   : > { %p2726_p0 = scmp.eq.s32.totalorder %s3300_s30, 1 }
 0x293   : > { %p2708_p1 = pnand %p2726_p0, %p2020_p7 }
 0x295   : > { %p2709_p2 = pneg %p2708_p1 }
 0x297   : > { %3013 = dma.done.wait (%p2709_p2), [#allocation9], 256  }
 0x298   : > { %3015 = vsyncadd (%p2709_p2), [#allocation9], 4294967040  ;;  %s27_s29 = sadd.s32 1, %s3026_s29   ;;  %s3301_s27 = smov %s3022_s28 }
 0x299   : > { %p24_p3 = scmp.ge.s32.totalorder %s27_s29, 4   ;;  %s3302_s28 = smov %s3304_s10 }
 0x29b   :  { %26 = sbr.rel (!%p24_p3) target bundleno = 8 (0x8), region = 135 }
 0x2a0   :  { %1900 = vsyncpa [#allocation8], 1 }
 0x2a1   :  { %1902 = vsyncpa [#allocation8 + $0x1], 1 }
 0x2a2   :  { %1903 = vsyncpa [#allocation11], 1 }
 0x2a3   :  { %1904 = vsyncpa [#allocation14], 1 }
 0x2a4   :  { %1905 = vsyncpa [#allocation17], 1 }
 0x2a5   :  { %1906 = vsyncpa [#allocation9], 1 }
 0x2a6   :  { %1908 = vsyncpa [#allocation9 + $0x1], 1 }

</bundles_post_ra>
